<compile_context>
chip_gen: v5e
topology: v5e:2x2
jax: 0.10.0
libtpu: 0.0.40
codegen_flags: <defaults>
</compile_context>

<pallas_src>
import functools
from itertools import combinations

import numpy as np
import jax
import jax.numpy as jnp
from jax.experimental import pallas as pl
from jax.experimental.pallas import tpu as pltpu


# ----------------------------------------------------------------------------
# Factor-graph bookkeeping (pure python / numpy, identical semantics to
# generate_graph / generate_all_graph / g_cord / h_cord of the reference).
# ----------------------------------------------------------------------------
MAXN = 15


def generate_graph(N):
    G = [[] for _ in range(N + N * (N - 1) + N * (N - 1) * (N - 2) // 6)]
    h_id = {c: i + N for i, c in enumerate(combinations(range(N), 2))}
    hidx = N + N * (N - 1) // 2
    for u in range(N):
        for v in range(u + 1, N):
            G[hidx].extend([u, v, h_id[u, v]])
            G[u].append(hidx)
            G[v].append(hidx)
            G[h_id[u, v]].append(hidx)
            hidx += 1
    if N > 2:
        gidx = N + N * (N - 1)
        for i in range(N):
            for j in range(i + 1, N):
                for k in range(j + 1, N):
                    z1, z2, z3 = (h_id[i, j], h_id[i, k], h_id[j, k])
                    G[gidx].extend([z1, z2, z3])
                    G[z1].append(gidx)
                    G[z2].append(gidx)
                    G[z3].append(gidx)
                    gidx += 1
    for l in G:
        while len(l) < max(3, N - 1):
            l.append(l[-1])
    return G


def generate_all_graph(maxn=MAXN):
    Gs = [[], []]
    for n in range(2, maxn + 1):
        Gs.append(generate_graph(n))
    return Gs


def generate_g_cord(maxn=MAXN):
    g_cord = [[], [], []]
    for N in range(3, maxn + 1):
        h_id = {c: i + N for i, c in enumerate(combinations(range(N), 2))}
        tmp = []
        for i in range(N):
            for j in range(i + 1, N):
                for k in range(j + 1, N):
                    tmp.append([h_id[i, j], h_id[i, k], h_id[j, k]])
        g_cord.append(tmp)
    return g_cord


def generate_h_cord(maxn=MAXN):
    h_cord = [[], []]
    for N in range(2, maxn + 1):
        h_cord.append([[*c, i + N] for i, c in enumerate(combinations(range(N), 2))])
    return h_cord


Gs = generate_all_graph()
g_cord = generate_g_cord()
h_cord = generate_h_cord()


def _pad_dims(max_n):
    P = max_n * (max_n - 1)                      # ordered pairs (i != j)
    Z = P // 2                                   # unordered pairs / z nodes
    Hc = Z                                       # h factors
    Gc = max_n * (max_n - 1) * (max_n - 2) // 6  # g factors
    NODES = max_n + Z                            # fgnn variable nodes (y + z)
    FACTORS = Hc + Gc
    TOT = NODES + FACTORS                        # total factor-graph nodes
    DEG = max(3, max_n - 1)                      # max neighbour degree
    return P, Z, Hc, Gc, NODES, FACTORS, TOT, DEG


@functools.lru_cache(maxsize=None)
def build_tables(max_n):
    """Per-N selection/mean matrices (padded to MAX_N sizes), cached by MAX_N.

    All factor-graph gathers/scatters become tiny dense matmuls with these
    matrices inside the fused kernel (no per-sample XLA scatter/gather HLOs).
    Index 0 of the leading axis is N (2..max_n); rows for padded entries are 0.
    """
    P, Z, Hc, Gc, NODES, FACTORS, TOT, DEG = _pad_dims(max_n)
    nv = max_n + 1
    s_i = np.zeros((nv, P, max_n), np.float32)
    s_j = np.zeros((nv, P, max_n), np.float32)
    s_z = np.zeros((nv, Z, P), np.float32)
    m_pair = np.zeros((nv, P, P), np.float32)
    s_fact_n = np.zeros((nv, FACTORS, max_n), np.float32)
    s_fact_z = np.zeros((nv, FACTORS, Z), np.float32)
    s_graph = np.zeros((nv, DEG, TOT, TOT), np.float32)

    for N in range(2, max_n + 1):
        pairs = [(i, j) for i in range(N) for j in range(N) if i != j]
        pidx = {p: k for k, p in enumerate(pairs)}
        combos = list(combinations(range(N), 2))
        for k, (i, j) in enumerate(pairs):
            s_i[N, k, i] = 1.0
            s_j[N, k, j] = 1.0
        for k, (i, j) in enumerate(combos):
            s_z[N, k, pidx[(i, j)]] = 1.0
        if N > 2:
            # ordered pair (i, j) reads the unordered z feature of {i, j}
            for k, (i, j) in enumerate(pairs):
                m_pair[N, k, pidx[(min(i, j), max(i, j))]] = 1.0
        else:
            # N == 2 branch: fc_interactions_final(interaction_flat) directly
            for k in range(len(pairs)):
                m_pair[N, k, k] = 1.0

        if N > 2:
            # h factors = mean of (y_i, y_j, z_ij); g factors = mean of 3 z's
            for k, trip in enumerate(h_cord[N]):
                for c in trip:
                    if c < N:
                        s_fact_n[N, k, c] += 1.0 / 3.0
                    else:
                        s_fact_z[N, k, c - N] += 1.0 / 3.0
            for k, trip in enumerate(g_cord[N]):
                for c in trip:
                    s_fact_z[N, Hc + k, c - N] += 1.0 / 3.0

            nC = N + N * (N - 1) // 2      # compact node count
            hC0 = nC                       # compact h-factor start
            gC0 = N + N * (N - 1)          # compact g-factor start

            def nff_pad(c):
                if c < N:
                    return c
                if c < nC:
                    return max_n + (c - N)
                if c < gC0:
                    return NODES + (c - hC0)
                return NODES + Hc + (c - gC0)

            graph = Gs[N]
            degN = max(3, N - 1)
            for t, row in enumerate(graph):
                r = nff_pad(t)
                for d in range(degN):
                    s_graph[N, d, r, nff_pad(row[d])] = 1.0

    # N-independent placement matrices: nff = P_a @ actn + P_z @ z + P_f @ fact
    p_a = np.zeros((TOT, max_n), np.float32)
    p_z = np.zeros((TOT, Z), np.float32)
    p_f = np.zeros((TOT, FACTORS), np.float32)
    p_a[:max_n, :] = np.eye(max_n, dtype=np.float32)
    p_z[max_n:NODES, :] = np.eye(Z, dtype=np.float32)
    p_f[NODES:, :] = np.eye(FACTORS, dtype=np.float32)
    return dict(s_i=s_i, s_j=s_j, s_z=s_z, m_pair=m_pair,
                s_fact_n=s_fact_n, s_fact_z=s_fact_z, s_graph=s_graph,
                p_a=p_a, p_z=p_z, p_f=p_f)


def _round_up(x, m):
    return ((x + m - 1) // m) * m


# ----------------------------------------------------------------------------
# Kernel 1: row- and K-tiled linear (+bias, +ReLU) for fc_emb_1.
# ----------------------------------------------------------------------------
def _linear_tiled_kernel(x_ref, w_ref, b_ref, o_ref, acc_ref, *, apply_relu):
    @pl.when(pl.program_id(1) == 0)
    def _():
        acc_ref[...] = jnp.zeros_like(acc_ref)

    acc_ref[...] += jnp.dot(x_ref[...], w_ref[...],
                            preferred_element_type=jnp.float32)

    @pl.when(pl.program_id(1) == pl.num_programs(1) - 1)
    def _():
        y = acc_ref[...] + b_ref[...]
        if apply_relu:
            y = jnp.maximum(y, 0.0)
        o_ref[...] = y.astype(o_ref.dtype)


def pallas_linear(x, w, b2, relu=False, tm_max=256, tk_max=512):
    """y = relu?(x @ w + b); x:(M,K), w:(K,N), b2:(1,N).  Tiled over M and K so
    the weight block stays within VMEM even at real CAGNet sizes (v7x 64MiB)."""
    M, K = x.shape
    Kw, N = w.shape
    assert K == Kw and b2.shape == (1, N)
    tm = min(tm_max, _round_up(M, 8))
    tk = min(tk_max, _round_up(K, 128))
    Mp, Kp = _round_up(M, tm), _round_up(K, tk)
    if Mp != M or Kp != K:
        x = jnp.pad(x, ((0, Mp - M), (0, Kp - K)))
    if Kp != K:
        w = jnp.pad(w, ((0, Kp - K), (0, 0)))
    out = pl.pallas_call(
        functools.partial(_linear_tiled_kernel, apply_relu=relu),
        out_shape=jax.ShapeDtypeStruct((Mp, N), jnp.float32),
        grid=(Mp // tm, Kp // tk),
        in_specs=[
            pl.BlockSpec((tm, tk), lambda i, k: (i, k)),
            pl.BlockSpec((tk, N), lambda i, k: (k, 0)),
            pl.BlockSpec((1, N), lambda i, k: (0, 0)),
        ],
        out_specs=pl.BlockSpec((tm, N), lambda i, k: (i, 0)),
        scratch_shapes=[pltpu.VMEM((tm, N), jnp.float32)],
        compiler_params=pltpu.CompilerParams(
            dimension_semantics=("parallel", "arbitrary")),
    )(x, w, b2)
    return out[:M] if Mp != M else out


# ----------------------------------------------------------------------------
# Kernel 2: fused per-sample CAGNet head.  One grid step = one (padded) sample;
# everything stays in VMEM, weights are resident via constant index maps.
# ----------------------------------------------------------------------------
def _fused_sample_kernel(nvalid_ref,
                         feats_ref, si_ref, sj_ref, sz_ref, mpair_ref,
                         sfn_ref, sfz_ref, sg_ref, pa_ref, pz_ref, pf_ref,
                         w_an_ref, b_an_ref, w_im_ref, b_im_ref,
                         w_e_ref, b_e_ref, w_am_ref, b_am_ref,
                         ln_g_ref, ln_b_ref, w_af_ref, b_af_ref,
                         w_if_ref, b_if_ref,
                         act_out_ref, int_out_ref, ew_out_ref):
    f32 = jnp.float32
    bt = pl.program_id(0)
    bf = feats_ref[...]                                           # (MAX_N, NFB)

    # fc_action_node + ReLU
    actn = jnp.maximum(
        jnp.dot(bf, w_an_ref[...], preferred_element_type=f32) + b_an_ref[...],
        0.0)                                                      # (MAX_N, NDIM)

    # pairwise (i != j) features -> fc_interactions_mid + ReLU
    # (weight split avoids an in-kernel concat: [bf_i, bf_j] @ W == bf_i@Wt + bf_j@Wb)
    nfb = w_im_ref.shape[0] // 2
    bf_i = jnp.dot(si_ref[...], bf, preferred_element_type=f32)   # (P, NFB)
    bf_j = jnp.dot(sj_ref[...], bf, preferred_element_type=f32)
    inter = jnp.dot(bf_i, w_im_ref[:nfb, :], preferred_element_type=f32)
    inter = inter + jnp.dot(bf_j, w_im_ref[nfb:, :], preferred_element_type=f32)
    inter = jnp.maximum(inter + b_im_ref[...], 0.0)               # (P, NDIM)

    # z node features (upper triangle) and h/g factor features (means)
    z_node = jnp.dot(sz_ref[...], inter, preferred_element_type=f32)   # (Z, NDIM)
    factf = jnp.dot(sfn_ref[...], actn, preferred_element_type=f32)
    factf = factf + jnp.dot(sfz_ref[...], z_node, preferred_element_type=f32)

    # fc_edge over factor-graph edge features:
    #   weight[t, d] = relu( nff[t] @ We_top + nff[graph[t, d]] @ We_bot + be )
    ndim = w_e_ref.shape[0] // 2
    we_top = w_e_ref[:ndim, :]
    we_bot = w_e_ref[ndim:, :]
    a_top = jnp.dot(actn, we_top, preferred_element_type=f32)
    z_top = jnp.dot(z_node, we_top, preferred_element_type=f32)
    f_top = jnp.dot(factf, we_top, preferred_element_type=f32)
    a_bot = jnp.dot(actn, we_bot, preferred_element_type=f32)
    z_bot = jnp.dot(z_node, we_bot, preferred_element_type=f32)
    f_bot = jnp.dot(factf, we_bot, preferred_element_type=f32)
    left = (jnp.dot(pa_ref[...], a_top, preferred_element_type=f32)
            + jnp.dot(pz_ref[...], z_top, preferred_element_type=f32)
            + jnp.dot(pf_ref[...], f_top, preferred_element_type=f32))   # (TOT, 16)
    nbr_src = (jnp.dot(pa_ref[...], a_bot, preferred_element_type=f32)
               + jnp.dot(pz_ref[...], z_bot, preferred_element_type=f32)
               + jnp.dot(pf_ref[...], f_bot, preferred_element_type=f32))
    deg = sg_ref.shape[0]
    for d in range(deg):  # static, tiny
        ew_out_ref[d] = jnp.maximum(
            left + jnp.dot(sg_ref[d], nbr_src, preferred_element_type=f32)
            + b_e_ref[...], 0.0)

    # TODO(synk): factor_mpnn (self.fgnn) is an external module with no
    # definition in the reference; identity message passing is used, so the
    # fgnn node output equals `nodefeature` and actn_node_score == actn, hence
    # the 2x below for the N > 2 branch.  The fc_edge weights above are what
    # the real fgnn would consume.
    n_valid = nvalid_ref[bt]
    scale = jnp.where(n_valid > 2, 2.0, 1.0).astype(f32)

    # action head: fc_action_mid -> LayerNorm -> ReLU -> fc_action_final (fused)
    h = jnp.dot(actn * scale, w_am_ref[...], preferred_element_type=f32)
    h = h + b_am_ref[...]
    mu = jnp.mean(h, axis=-1, keepdims=True)
    var = jnp.mean((h - mu) ** 2, axis=-1, keepdims=True)
    h = (h - mu) * jax.lax.rsqrt(var + 1e-5)
    h = jnp.maximum(h * ln_g_ref[...] + ln_b_ref[...], 0.0)
    act_out_ref[...] = (jnp.dot(h, w_af_ref[...], preferred_element_type=f32)
                        + b_af_ref[...])

    # interaction head: fc_interactions_final on the (re)packed pair features
    isin = jnp.dot(mpair_ref[...], inter, preferred_element_type=f32)    # (P, NDIM)
    int_out_ref[...] = (jnp.dot(isin, w_if_ref[...], preferred_element_type=f32)
                        + b_if_ref[...])


@jax.jit
def _fgnn_core(params, tabs, roi, nvalid):
    BT, MAX_N, FIN = roi.shape
    NFB = params["emb_w"].shape[1]
    NDIM = params["act_node_w"].shape[1]
    NMID = params["act_mid_w"].shape[1]
    A = params["act_final_w"].shape[1]
    P = tabs["s_i"].shape[1]
    Z = tabs["s_z"].shape[1]
    FACTORS = tabs["s_fact_n"].shape[1]
    DEG, TOT = tabs["s_graph"].shape[1], tabs["s_graph"].shape[2]

    # fc_emb_1 + ReLU, one batched call over all BT*MAX_N boxes
    # (dropout_emb_1 is identity at inference)
    feats = pallas_linear(roi.reshape(BT * MAX_N, FIN),
                          params["emb_w"], params["emb_b"], relu=True)
    feats = feats.reshape(BT, MAX_N, NFB)

    def smap3(bt, n_ref):
        return (bt, 0, 0)

    def smap4(bt, n_ref):
        return (bt, 0, 0, 0)

    def cmap(bt, n_ref):
        return (0, 0)

    grid_spec = pltpu.PrefetchScalarGridSpec(
        num_scalar_prefetch=1,
        grid=(BT,),
        in_specs=[
            pl.BlockSpec((None, MAX_N, NFB), smap3),      # feats
            pl.BlockSpec((None, P, MAX_N), smap3),        # s_i
            pl.BlockSpec((None, P, MAX_N), smap3),        # s_j
            pl.BlockSpec((None, Z, P), smap3),            # s_z
            pl.BlockSpec((None, P, P), smap3),            # m_pair
            pl.BlockSpec((None, FACTORS, MAX_N), smap3),  # s_fact_n
            pl.BlockSpec((None, FACTORS, Z), smap3),      # s_fact_z
            pl.BlockSpec((None, DEG, TOT, TOT), smap4),   # s_graph
            pl.BlockSpec((TOT, MAX_N), cmap),             # p_a
            pl.BlockSpec((TOT, Z), cmap),                 # p_z
            pl.BlockSpec((TOT, FACTORS), cmap),           # p_f
            pl.BlockSpec((NFB, NDIM), cmap),              # act_node_w
            pl.BlockSpec((1, NDIM), cmap),                # act_node_b
            pl.BlockSpec((2 * NFB, NDIM), cmap),          # inter_mid_w
            pl.BlockSpec((1, NDIM), cmap),                # inter_mid_b
            pl.BlockSpec((2 * NDIM, 16), cmap),           # edge_w
            pl.BlockSpec((1, 16), cmap),                  # edge_b
            pl.BlockSpec((NDIM, NMID), cmap),             # act_mid_w
            pl.BlockSpec((1, NMID), cmap),                # act_mid_b
            pl.BlockSpec((1, NMID), cmap),                # ln_gamma
            pl.BlockSpec((1, NMID), cmap),                # ln_beta
            pl.BlockSpec((NMID, A), cmap),                # act_final_w
            pl.BlockSpec((1, A), cmap),                   # act_final_b
            pl.BlockSpec((NDIM, 2), cmap),                # inter_final_w
            pl.BlockSpec((1, 2), cmap),                   # inter_final_b
        ],
        out_specs=(
            pl.BlockSpec((None, MAX_N, A), smap3),
            pl.BlockSpec((None, P, 2), smap3),
            pl.BlockSpec((None, DEG, TOT, 16), smap4),
        ),
    )

    act_pad, int_pad, edge_w = pl.pallas_call(
        _fused_sample_kernel,
        out_shape=(
            jax.ShapeDtypeStruct((BT, MAX_N, A), jnp.float32),
            jax.ShapeDtypeStruct((BT, P, 2), jnp.float32),
            jax.ShapeDtypeStruct((BT, DEG, TOT, 16), jnp.float32),
        ),
        grid_spec=grid_spec,
        compiler_params=pltpu.CompilerParams(
            dimension_semantics=("parallel",)),  # shard samples across TCs (v7x)
    )(nvalid, feats,
      tabs["s_i"], tabs["s_j"], tabs["s_z"], tabs["m_pair"],
      tabs["s_fact_n"], tabs["s_fact_z"], tabs["s_graph"],
      tabs["p_a"], tabs["p_z"], tabs["p_f"],
      params["act_node_w"], params["act_node_b"],
      params["inter_mid_w"], params["inter_mid_b"],
      params["edge_w"], params["edge_b"],
      params["act_mid_w"], params["act_mid_b"],
      params["ln_gamma"], params["ln_beta"],
      params["act_final_w"], params["act_final_b"],
      params["inter_final_w"], params["inter_final_b"])
    return act_pad, int_pad, edge_w


# ----------------------------------------------------------------------------
# Parameters (deterministic kaiming-normal init, shapes from __init__).
# Biases / LN params are stored pre-shaped (1, dim) for direct kernel use.
# ----------------------------------------------------------------------------
def init_params(key, cfg):
    D = cfg["emb_features"]
    K = cfg["crop_size"]
    NFB = cfg["num_features_boxes"]
    NDIM, NMID = 128, 64
    A = cfg["num_actions"]

    def kaiming(k, fan_in, fan_out):
        return (jax.random.normal(k, (fan_in, fan_out), jnp.float32)
                * np.sqrt(2.0 / fan_in))

    ks = jax.random.split(key, 8)
    return {
        "emb_w": kaiming(ks[0], K * K * D, NFB),
        "emb_b": jnp.zeros((1, NFB), jnp.float32),
        "act_node_w": kaiming(ks[1], NFB, NDIM),
        "act_node_b": jnp.zeros((1, NDIM), jnp.float32),
        "act_mid_w": kaiming(ks[2], NDIM, NMID),
        "act_mid_b": jnp.zeros((1, NMID), jnp.float32),
        "ln_gamma": jnp.ones((1, NMID), jnp.float32),
        "ln_beta": jnp.zeros((1, NMID), jnp.float32),
        "act_final_w": kaiming(ks[3], NMID, A),
        "act_final_b": jnp.zeros((1, A), jnp.float32),
        "inter_mid_w": kaiming(ks[4], 2 * NFB, NDIM),
        "inter_mid_b": jnp.zeros((1, NDIM), jnp.float32),
        "inter_final_w": kaiming(ks[5], NDIM, 2),
        "inter_final_b": jnp.zeros((1, 2), jnp.float32),
        "edge_w": kaiming(ks[6], 2 * NDIM, 16),
        "edge_b": jnp.zeros((1, 16), jnp.float32),
        "lambda_h": jnp.array([cfg["lambda_h"]], jnp.float32),
        "lambda_g": jnp.array([cfg["lambda_g"]], jnp.float32),
    }


# ----------------------------------------------------------------------------
# Forward pass (post roi_align / from fc_emb_1 onward).
# ----------------------------------------------------------------------------
# TODO(synk): backbone (get_backbone), prep_images, F.interpolate and roi_align
# are external modules; the pipeline starts from the ROI-pooled box features.
def basenet_fgnn_forward(params, boxes_features_roi, bboxes_num, cfg):
    BT, MAX_N, FIN = boxes_features_roi.shape
    assert 3 <= MAX_N <= MAXN, "precomputed factor-graph tables cover 3..15 boxes"
    bn = np.asarray(bboxes_num, dtype=np.int32).reshape(BT)
    assert np.all((bn >= 2) & (bn <= MAX_N)), "bboxes_num out of range"

    tables = build_tables(MAX_N)                 # cached by MAX_N
    tabs = {
        "s_i": jnp.asarray(tables["s_i"][bn]),
        "s_j": jnp.asarray(tables["s_j"][bn]),
        "s_z": jnp.asarray(tables["s_z"][bn]),
        "m_pair": jnp.asarray(tables["m_pair"][bn]),
        "s_fact_n": jnp.asarray(tables["s_fact_n"][bn]),
        "s_fact_z": jnp.asarray(tables["s_fact_z"][bn]),
        "s_graph": jnp.asarray(tables["s_graph"][bn]),
        "p_a": jnp.asarray(tables["p_a"]),
        "p_z": jnp.asarray(tables["p_z"]),
        "p_f": jnp.asarray(tables["p_f"]),
    }

    act_pad, int_pad, _edge_w = _fgnn_core(
        params, tabs, jnp.asarray(boxes_features_roi, jnp.float32),
        jnp.asarray(bn))

    # TODO(synk): meanfield() is external / undefined in the reference; the raw
    # per-box action scores and per-pair interaction scores are returned.
    # Compact the padded outputs back into the original ragged concatenation.
    A = act_pad.shape[-1]
    P = int_pad.shape[1]
    act_idx = np.concatenate(
        [bt * MAX_N + np.arange(n) for bt, n in enumerate(bn)]).astype(np.int32)
    int_idx = np.concatenate(
        [bt * P + np.arange(n * (n - 1)) for bt, n in enumerate(bn)]).astype(np.int32)
    q_y = act_pad.reshape(BT * MAX_N, A)[act_idx]
    q_z = int_pad.reshape(BT * P, 2)[int_idx]
    return q_y, q_z


# ----------------------------------------------------------------------------
# Main
# ----------------------------------------------------------------------------
if __name__ == "__main__":
    cfg = dict(
        emb_features=4,          # D
        crop_size=5,             # K  -> fc_emb_1 input = K*K*D = 100
        num_features_boxes=32,   # NFB
        num_actions=8,
        num_boxes=4,             # MAX_N
        lambda_h=1.0,
        lambda_g=1.0,
    )
    B, T = 2, 1
    MAX_N = cfg["num_boxes"]
    FIN = cfg["crop_size"] * cfg["crop_size"] * cfg["emb_features"]

    key = jax.random.PRNGKey(0)
    kp, kx = jax.random.split(key)
    params = init_params(kp, cfg)

    # stands in for roi_align(backbone(images)) output, flattened per box
    boxes_features_roi = jax.random.normal(kx, (B * T, MAX_N, FIN), jnp.float32)
    bboxes_num = np.array([4, 2], dtype=np.int32)  # exercises N>2 and N==2 paths

    q_y, q_z = basenet_fgnn_forward(params, boxes_features_roi, bboxes_num, cfg)
    jax.block_until_ready((q_y, q_z))

    assert q_y.shape == (4 + 2, cfg["num_actions"])
    assert q_z.shape == (4 * 3 + 2 * 1, 2)
    print("KERNEL_OK")
</pallas_src>

<mosaic_0001>
module attributes {stable_mosaic.version = 11 : i64} {
  func.func @_linear_tiled_kernel(%arg0: i32, %arg1: i32, %arg2: memref<8x128xf32, #tpu.memory_space<vmem>>, %arg3: memref<128x32xf32, #tpu.memory_space<vmem>>, %arg4: memref<1x32xf32, #tpu.memory_space<vmem>>, %arg5: memref<8x32xf32, #tpu.memory_space<vmem>>, %arg6: memref<8x32xf32, #tpu.memory_space<vmem>>) attributes {dimension_semantics = [#tpu.dimension_semantics<parallel>, #tpu.dimension_semantics<arbitrary>], iteration_bounds = array<i64: 1, 1>, scalar_prefetch = 0 : i64, scratch_operands = 1 : i64, tpu.core_type = #tpu.core_type<tc>, window_params = [{transform_indices = @transform_0, window_bounds = array<i64: 8, 128>}, {transform_indices = @transform_1, window_bounds = array<i64: 128, 32>}, {pipeline_mode = #tpu.pipeline_mode<synchronous>, transform_indices = @transform_2, window_bounds = array<i64: 1, 32>}, {transform_indices = @transform_3, window_bounds = array<i64: 8, 32>}]} {
    %c0_i32 = arith.constant 0 : i32
    %0 = arith.cmpi eq, %arg1, %c0_i32 : i32
    %1 = arith.extui %0 : i1 to i32
    %c0_i32_0 = arith.constant 0 : i32
    %2 = arith.cmpi ne, %1, %c0_i32_0 : i32
    scf.if %2 {
      %cst_10 = arith.constant 0.000000e+00 : f32
      %12 = vector.broadcast %cst_10 : f32 to vector<8x32xf32>
      %c0_11 = arith.constant 0 : index
      %c0_12 = arith.constant 0 : index
      %13 = vector.load %arg6[%c0_11, %c0_12] : memref<8x32xf32, #tpu.memory_space<vmem>>, vector<8x32xf32>
      tpu.vector_store %arg6[%c0_11, %c0_12], %12 {strides = array<i32>} : memref<8x32xf32, #tpu.memory_space<vmem>>, vector<8x32xf32>,
    } else {
    }
    %c0 = arith.constant 0 : index
    %c0_1 = arith.constant 0 : index
    %3 = vector.load %arg6[%c0, %c0_1] : memref<8x32xf32, #tpu.memory_space<vmem>>, vector<8x32xf32>
    %c0_2 = arith.constant 0 : index
    %c0_3 = arith.constant 0 : index
    %4 = vector.load %arg2[%c0_2, %c0_3] : memref<8x128xf32, #tpu.memory_space<vmem>>, vector<8x128xf32>
    %c0_4 = arith.constant 0 : index
    %c0_5 = arith.constant 0 : index
    %5 = vector.load %arg3[%c0_4, %c0_5] : memref<128x32xf32, #tpu.memory_space<vmem>>, vector<128x32xf32>
    %cst = arith.constant dense<0.000000e+00> : vector<8x32xf32>
    %6 = tpu.matmul %4, %5, %cst {dimension_numbers = #tpu.dot_dimension_numbers<[1], [0], [0], [1], [0, 0, 1, 1], [], []>} : vector<8x128xf32>, vector<128x32xf32>, vector<8x32xf32> -> vector<8x32xf32>
    %7 = arith.addf %3, %6 : vector<8x32xf32>
    %c0_6 = arith.constant 0 : index
    %c0_7 = arith.constant 0 : index
    %8 = vector.load %arg6[%c0_6, %c0_7] : memref<8x32xf32, #tpu.memory_space<vmem>>, vector<8x32xf32>
    tpu.vector_store %arg6[%c0_6, %c0_7], %7 {strides = array<i32>} : memref<8x32xf32, #tpu.memory_space<vmem>>, vector<8x32xf32>,
    %c0_i32_8 = arith.constant 0 : i32
    %9 = arith.cmpi eq, %arg1, %c0_i32_8 : i32
    %10 = arith.extui %9 : i1 to i32
    %c0_i32_9 = arith.constant 0 : i32
    %11 = arith.cmpi ne, %10, %c0_i32_9 : i32
    scf.if %11 {
      %c0_10 = arith.constant 0 : index
      %c0_11 = arith.constant 0 : index
      %12 = vector.load %arg6[%c0_10, %c0_11] : memref<8x32xf32, #tpu.memory_space<vmem>>, vector<8x32xf32>
      %c0_12 = arith.constant 0 : index
      %c0_13 = arith.constant 0 : index
      %13 = vector.load %arg4[%c0_12, %c0_13] : memref<1x32xf32, #tpu.memory_space<vmem>>, vector<1x32xf32>
      %14 = vector.broadcast %13 : vector<1x32xf32> to vector<8x32xf32>
      %15 = arith.addf %12, %14 : vector<8x32xf32>
      %cst_14 = arith.constant 0.000000e+00 : f32
      %16 = vector.broadcast %cst_14 : f32 to vector<8x32xf32>
      %17 = arith.maximumf %15, %16 : vector<8x32xf32>
      %c0_15 = arith.constant 0 : index
      %c0_16 = arith.constant 0 : index
      %18 = vector.load %arg5[%c0_15, %c0_16] : memref<8x32xf32, #tpu.memory_space<vmem>>, vector<8x32xf32>
      tpu.vector_store %arg5[%c0_15, %c0_16], %17 {strides = array<i32>} : memref<8x32xf32, #tpu.memory_space<vmem>>, vector<8x32xf32>,
    } else {
    }
    return
  }
  func.func @transform_0(%arg0: i32, %arg1: i32) -> (i32, i32) {
    %c0_i32 = arith.constant 0 : i32
    return %arg0, %arg1 : i32, i32
  }
  func.func @transform_1(%arg0: i32, %arg1: i32) -> (i32, i32) {
    %c0_i32 = arith.constant 0 : i32
    %c0_i32_0 = arith.constant 0 : i32
    return %arg1, %c0_i32 : i32, i32
  }
  func.func @transform_2(%arg0: i32, %arg1: i32) -> (i32, i32) {
    %c0_i32 = arith.constant 0 : i32
    %c0_i32_0 = arith.constant 0 : i32
    %c0_i32_1 = arith.constant 0 : i32
    return %c0_i32, %c0_i32_0 : i32, i32
  }
  func.func @transform_3(%arg0: i32, %arg1: i32) -> (i32, i32) {
    %c0_i32 = arith.constant 0 : i32
    %c0_i32_0 = arith.constant 0 : i32
    return %arg0, %c0_i32 : i32, i32
  }
}

module attributes {stable_mosaic.version = 11 : i64} {
  func.func @_fused_sample_kernel(%arg0: i32, %arg1: memref<2xi32, #tpu.memory_space<smem>>, %arg2: memref<1x4x32xf32, #tpu.memory_space<vmem>>, %arg3: memref<1x12x4xf32, #tpu.memory_space<vmem>>, %arg4: memref<1x12x4xf32, #tpu.memory_space<vmem>>, %arg5: memref<1x6x12xf32, #tpu.memory_space<vmem>>, %arg6: memref<1x12x12xf32, #tpu.memory_space<vmem>>, %arg7: memref<1x10x4xf32, #tpu.memory_space<vmem>>, %arg8: memref<1x10x6xf32, #tpu.memory_space<vmem>>, %arg9: memref<1x3x20x20xf32, #tpu.memory_space<vmem>>, %arg10: memref<20x4xf32, #tpu.memory_space<vmem>>, %arg11: memref<20x6xf32, #tpu.memory_space<vmem>>, %arg12: memref<20x10xf32, #tpu.memory_space<vmem>>, %arg13: memref<32x128xf32, #tpu.memory_space<vmem>>, %arg14: memref<1x128xf32, #tpu.memory_space<vmem>>, %arg15: memref<64x128xf32, #tpu.memory_space<vmem>>, %arg16: memref<1x128xf32, #tpu.memory_space<vmem>>, %arg17: memref<256x16xf32, #tpu.memory_space<vmem>>, %arg18: memref<1x16xf32, #tpu.memory_space<vmem>>, %arg19: memref<128x64xf32, #tpu.memory_space<vmem>>, %arg20: memref<1x64xf32, #tpu.memory_space<vmem>>, %arg21: memref<1x64xf32, #tpu.memory_space<vmem>>, %arg22: memref<1x64xf32, #tpu.memory_space<vmem>>, %arg23: memref<64x8xf32, #tpu.memory_space<vmem>>, %arg24: memref<1x8xf32, #tpu.memory_space<vmem>>, %arg25: memref<128x2xf32, #tpu.memory_space<vmem>>, %arg26: memref<1x2xf32, #tpu.memory_space<vmem>>, %arg27: memref<1x4x8xf32, #tpu.memory_space<vmem>>, %arg28: memref<1x12x2xf32, #tpu.memory_space<vmem>>, %arg29: memref<1x3x20x16xf32, #tpu.memory_space<vmem>>) attributes {dimension_semantics = [#tpu.dimension_semantics<parallel>], iteration_bounds = array<i64: 2>, scalar_prefetch = 1 : i64, scratch_operands = 0 : i64, tpu.core_type = #tpu.core_type<tc>, window_params = [{transform_indices = @transform_0, window_bounds = array<i64: 1, 4, 32>}, {transform_indices = @transform_1, window_bounds = array<i64: 1, 12, 4>}, {transform_indices = @transform_2, window_bounds = array<i64: 1, 12, 4>}, {transform_indices = @transform_3, window_bounds = array<i64: 1, 6, 12>}, {transform_indices = @transform_4, window_bounds = array<i64: 1, 12, 12>}, {transform_indices = @transform_5, window_bounds = array<i64: 1, 10, 4>}, {transform_indices = @transform_6, window_bounds = array<i64: 1, 10, 6>}, {transform_indices = @transform_7, window_bounds = array<i64: 1, 3, 20, 20>}, {pipeline_mode = #tpu.pipeline_mode<synchronous>, transform_indices = @transform_8, window_bounds = array<i64: 20, 4>}, {pipeline_mode = #tpu.pipeline_mode<synchronous>, transform_indices = @transform_9, window_bounds = array<i64: 20, 6>}, {pipeline_mode = #tpu.pipeline_mode<synchronous>, transform_indices = @transform_10, window_bounds = array<i64: 20, 10>}, {pipeline_mode = #tpu.pipeline_mode<synchronous>, transform_indices = @transform_11, window_bounds = array<i64: 32, 128>}, {pipeline_mode = #tpu.pipeline_mode<synchronous>, transform_indices = @transform_12, window_bounds = array<i64: 1, 128>}, {pipeline_mode = #tpu.pipeline_mode<synchronous>, transform_indices = @transform_13, window_bounds = array<i64: 64, 128>}, {pipeline_mode = #tpu.pipeline_mode<synchronous>, transform_indices = @transform_14, window_bounds = array<i64: 1, 128>}, {pipeline_mode = #tpu.pipeline_mode<synchronous>, transform_indices = @transform_15, window_bounds = array<i64: 256, 16>}, {pipeline_mode = #tpu.pipeline_mode<synchronous>, transform_indices = @transform_16, window_bounds = array<i64: 1, 16>}, {pipeline_mode = #tpu.pipeline_mode<synchronous>, transform_indices = @transform_17, window_bounds = array<i64: 128, 64>}, {pipeline_mode = #tpu.pipeline_mode<synchronous>, transform_indices = @transform_18, window_bounds = array<i64: 1, 64>}, {pipeline_mode = #tpu.pipeline_mode<synchronous>, transform_indices = @transform_19, window_bounds = array<i64: 1, 64>}, {pipeline_mode = #tpu.pipeline_mode<synchronous>, transform_indices = @transform_20, window_bounds = array<i64: 1, 64>}, {pipeline_mode = #tpu.pipeline_mode<synchronous>, transform_indices = @transform_21, window_bounds = array<i64: 64, 8>}, {pipeline_mode = #tpu.pipeline_mode<synchronous>, transform_indices = @transform_22, window_bounds = array<i64: 1, 8>}, {pipeline_mode = #tpu.pipeline_mode<synchronous>, transform_indices = @transform_23, window_bounds = array<i64: 128, 2>}, {pipeline_mode = #tpu.pipeline_mode<synchronous>, transform_indices = @transform_24, window_bounds = array<i64: 1, 2>}, {transform_indices = @transform_25, window_bounds = array<i64: 1, 4, 8>}, {transform_indices = @transform_26, window_bounds = array<i64: 1, 12, 2>}, {transform_indices = @transform_27, window_bounds = array<i64: 1, 3, 20, 16>}]} {
    %c0 = arith.constant 0 : index
    %c0_0 = arith.constant 0 : index
    %c0_1 = arith.constant 0 : index
    %0 = vector.load %arg2[%c0, %c0_0, %c0_1] : memref<1x4x32xf32, #tpu.memory_space<vmem>>, vector<1x4x32xf32>
    %1 = vector.shape_cast %0 : vector<1x4x32xf32> to vector<4x32xf32>
    %c0_2 = arith.constant 0 : index
    %c0_3 = arith.constant 0 : index
    %2 = vector.load %arg13[%c0_2, %c0_3] : memref<32x128xf32, #tpu.memory_space<vmem>>, vector<32x128xf32>
    %cst = arith.constant dense<0.000000e+00> : vector<4x128xf32>
    %3 = tpu.matmul %1, %2, %cst {dimension_numbers = #tpu.dot_dimension_numbers<[1], [0], [0], [1], [0, 0, 1, 1], [], []>} : vector<4x32xf32>, vector<32x128xf32>, vector<4x128xf32> -> vector<4x128xf32>
    %c0_4 = arith.constant 0 : index
    %c0_5 = arith.constant 0 : index
    %4 = vector.load %arg14[%c0_4, %c0_5] : memref<1x128xf32, #tpu.memory_space<vmem>>, vector<1x128xf32>
    %5 = vector.broadcast %4 : vector<1x128xf32> to vector<4x128xf32>
    %6 = arith.addf %3, %5 : vector<4x128xf32>
    %cst_6 = arith.constant 0.000000e+00 : f32
    %7 = vector.broadcast %cst_6 : f32 to vector<4x128xf32>
    %8 = arith.maximumf %6, %7 : vector<4x128xf32>
    %c0_7 = arith.constant 0 : index
    %c0_8 = arith.constant 0 : index
    %c0_9 = arith.constant 0 : index
    %9 = vector.load %arg3[%c0_7, %c0_8, %c0_9] : memref<1x12x4xf32, #tpu.memory_space<vmem>>, vector<1x12x4xf32>
    %10 = vector.shape_cast %9 : vector<1x12x4xf32> to vector<12x4xf32>
    %cst_10 = arith.constant dense<0.000000e+00> : vector<12x32xf32>
    %11 = tpu.matmul %10, %1, %cst_10 {dimension_numbers = #tpu.dot_dimension_numbers<[1], [0], [0], [1], [0, 0, 1, 1], [], []>} : vector<12x4xf32>, vector<4x32xf32>, vector<12x32xf32> -> vector<12x32xf32>
    %c0_11 = arith.constant 0 : index
    %c0_12 = arith.constant 0 : index
    %c0_13 = arith.constant 0 : index
    %12 = vector.load %arg4[%c0_11, %c0_12, %c0_13] : memref<1x12x4xf32, #tpu.memory_space<vmem>>, vector<1x12x4xf32>
    %13 = vector.shape_cast %12 : vector<1x12x4xf32> to vector<12x4xf32>
    %cst_14 = arith.constant dense<0.000000e+00> : vector<12x32xf32>
    %14 = tpu.matmul %13, %1, %cst_14 {dimension_numbers = #tpu.dot_dimension_numbers<[1], [0], [0], [1], [0, 0, 1, 1], [], []>} : vector<12x4xf32>, vector<4x32xf32>, vector<12x32xf32> -> vector<12x32xf32>
    %c0_15 = arith.constant 0 : index
    %c0_16 = arith.constant 0 : index
    %15 = vector.load %arg15[%c0_15, %c0_16] : memref<64x128xf32, #tpu.memory_space<vmem>>, vector<32x128xf32>
    %cst_17 = arith.constant dense<0.000000e+00> : vector<12x128xf32>
    %16 = tpu.matmul %11, %15, %cst_17 {dimension_numbers = #tpu.dot_dimension_numbers<[1], [0], [0], [1], [0, 0, 1, 1], [], []>} : vector<12x32xf32>, vector<32x128xf32>, vector<12x128xf32> -> vector<12x128xf32>
    %c32 = arith.constant 32 : index
    %c0_18 = arith.constant 0 : index
    %17 = vector.load %arg15[%c32, %c0_18] : memref<64x128xf32, #tpu.memory_space<vmem>>, vector<32x128xf32>
    %cst_19 = arith.constant dense<0.000000e+00> : vector<12x128xf32>
    %18 = tpu.matmul %14, %17, %cst_19 {dimension_numbers = #tpu.dot_dimension_numbers<[1], [0], [0], [1], [0, 0, 1, 1], [], []>} : vector<12x32xf32>, vector<32x128xf32>, vector<12x128xf32> -> vector<12x128xf32>
    %19 = arith.addf %16, %18 : vector<12x128xf32>
    %c0_20 = arith.constant 0 : index
    %c0_21 = arith.constant 0 : index
    %20 = vector.load %arg16[%c0_20, %c0_21] : memref<1x128xf32, #tpu.memory_space<vmem>>, vector<1x128xf32>
    %21 = vector.broadcast %20 : vector<1x128xf32> to vector<12x128xf32>
    %22 = arith.addf %19, %21 : vector<12x128xf32>
    %cst_22 = arith.constant 0.000000e+00 : f32
    %23 = vector.broadcast %cst_22 : f32 to vector<12x128xf32>
    %24 = arith.maximumf %22, %23 : vector<12x128xf32>
    %c0_23 = arith.constant 0 : index
    %c0_24 = arith.constant 0 : index
    %c0_25 = arith.constant 0 : index
    %25 = vector.load %arg5[%c0_23, %c0_24, %c0_25] : memref<1x6x12xf32, #tpu.memory_space<vmem>>, vector<1x6x12xf32>
    %26 = vector.shape_cast %25 : vector<1x6x12xf32> to vector<6x12xf32>
    %cst_26 = arith.constant dense<0.000000e+00> : vector<6x128xf32>
    %27 = tpu.matmul %26, %24, %cst_26 {dimension_numbers = #tpu.dot_dimension_numbers<[1], [0], [0], [1], [0, 0, 1, 1], [], []>} : vector<6x12xf32>, vector<12x128xf32>, vector<6x128xf32> -> vector<6x128xf32>
    %c0_27 = arith.constant 0 : index
    %c0_28 = arith.constant 0 : index
    %c0_29 = arith.constant 0 : index
    %28 = vector.load %arg7[%c0_27, %c0_28, %c0_29] : memref<1x10x4xf32, #tpu.memory_space<vmem>>, vector<1x10x4xf32>
    %29 = vector.shape_cast %28 : vector<1x10x4xf32> to vector<10x4xf32>
    %cst_30 = arith.constant dense<0.000000e+00> : vector<10x128xf32>
    %30 = tpu.matmul %29, %8, %cst_30 {dimension_numbers = #tpu.dot_dimension_numbers<[1], [0], [0], [1], [0, 0, 1, 1], [], []>} : vector<10x4xf32>, vector<4x128xf32>, vector<10x128xf32> -> vector<10x128xf32>
    %c0_31 = arith.constant 0 : index
    %c0_32 = arith.constant 0 : index
    %c0_33 = arith.constant 0 : index
    %31 = vector.load %arg8[%c0_31, %c0_32, %c0_33] : memref<1x10x6xf32, #tpu.memory_space<vmem>>, vector<1x10x6xf32>
    %32 = vector.shape_cast %31 : vector<1x10x6xf32> to vector<10x6xf32>
    %cst_34 = arith.constant dense<0.000000e+00> : vector<10x128xf32>
    %33 = tpu.matmul %32, %27, %cst_34 {dimension_numbers = #tpu.dot_dimension_numbers<[1], [0], [0], [1], [0, 0, 1, 1], [], []>} : vector<10x6xf32>, vector<6x128xf32>, vector<10x128xf32> -> vector<10x128xf32>
    %34 = arith.addf %30, %33 : vector<10x128xf32>
    %c0_35 = arith.constant 0 : index
    %c0_36 = arith.constant 0 : index
    %35 = vector.load %arg17[%c0_35, %c0_36] : memref<256x16xf32, #tpu.memory_space<vmem>>, vector<128x16xf32>
    %c128 = arith.constant 128 : index
    %c0_37 = arith.constant 0 : index
    %36 = vector.load %arg17[%c128, %c0_37] : memref<256x16xf32, #tpu.memory_space<vmem>>, vector<128x16xf32>
    %cst_38 = arith.constant dense<0.000000e+00> : vector<4x16xf32>
    %37 = tpu.matmul %8, %35, %cst_38 {dimension_numbers = #tpu.dot_dimension_numbers<[1], [0], [0], [1], [0, 0, 1, 1], [], []>} : vector<4x128xf32>, vector<128x16xf32>, vector<4x16xf32> -> vector<4x16xf32>
    %cst_39 = arith.constant dense<0.000000e+00> : vector<6x16xf32>
    %38 = tpu.matmul %27, %35, %cst_39 {dimension_numbers = #tpu.dot_dimension_numbers<[1], [0], [0], [1], [0, 0, 1, 1], [], []>} : vector<6x128xf32>, vector<128x16xf32>, vector<6x16xf32> -> vector<6x16xf32>
    %cst_40 = arith.constant dense<0.000000e+00> : vector<10x16xf32>
    %39 = tpu.matmul %34, %35, %cst_40 {dimension_numbers = #tpu.dot_dimension_numbers<[1], [0], [0], [1], [0, 0, 1, 1], [], []>} : vector<10x128xf32>, vector<128x16xf32>, vector<10x16xf32> -> vector<10x16xf32>
    %cst_41 = arith.constant dense<0.000000e+00> : vector<4x16xf32>
    %40 = tpu.matmul %8, %36, %cst_41 {dimension_numbers = #tpu.dot_dimension_numbers<[1], [0], [0], [1], [0, 0, 1, 1], [], []>} : vector<4x128xf32>, vector<128x16xf32>, vector<4x16xf32> -> vector<4x16xf32>
    %cst_42 = arith.constant dense<0.000000e+00> : vector<6x16xf32>
    %41 = tpu.matmul %27, %36, %cst_42 {dimension_numbers = #tpu.dot_dimension_numbers<[1], [0], [0], [1], [0, 0, 1, 1], [], []>} : vector<6x128xf32>, vector<128x16xf32>, vector<6x16xf32> -> vector<6x16xf32>
    %cst_43 = arith.constant dense<0.000000e+00> : vector<10x16xf32>
    %42 = tpu.matmul %34, %36, %cst_43 {dimension_numbers = #tpu.dot_dimension_numbers<[1], [0], [0], [1], [0, 0, 1, 1], [], []>} : vector<10x128xf32>, vector<128x16xf32>, vector<10x16xf32> -> vector<10x16xf32>
    %c0_44 = arith.constant 0 : index
    %c0_45 = arith.constant 0 : index
    %43 = vector.load %arg10[%c0_44, %c0_45] : memref<20x4xf32, #tpu.memory_space<vmem>>, vector<20x4xf32>
    %cst_46 = arith.constant dense<0.000000e+00> : vector<20x16xf32>
    %44 = tpu.matmul %43, %37, %cst_46 {dimension_numbers = #tpu.dot_dimension_numbers<[1], [0], [0], [1], [0, 0, 1, 1], [], []>} : vector<20x4xf32>, vector<4x16xf32>, vector<20x16xf32> -> vector<20x16xf32>
    %c0_47 = arith.constant 0 : index
    %c0_48 = arith.constant 0 : index
    %45 = vector.load %arg11[%c0_47, %c0_48] : memref<20x6xf32, #tpu.memory_space<vmem>>, vector<20x6xf32>
    %cst_49 = arith.constant dense<0.000000e+00> : vector<20x16xf32>
    %46 = tpu.matmul %45, %38, %cst_49 {dimension_numbers = #tpu.dot_dimension_numbers<[1], [0], [0], [1], [0, 0, 1, 1], [], []>} : vector<20x6xf32>, vector<6x16xf32>, vector<20x16xf32> -> vector<20x16xf32>
    %47 = arith.addf %44, %46 : vector<20x16xf32>
    %c0_50 = arith.constant 0 : index
    %c0_51 = arith.constant 0 : index
    %48 = vector.load %arg12[%c0_50, %c0_51] : memref<20x10xf32, #tpu.memory_space<vmem>>, vector<20x10xf32>
    %cst_52 = arith.constant dense<0.000000e+00> : vector<20x16xf32>
    %49 = tpu.matmul %48, %39, %cst_52 {dimension_numbers = #tpu.dot_dimension_numbers<[1], [0], [0], [1], [0, 0, 1, 1], [], []>} : vector<20x10xf32>, vector<10x16xf32>, vector<20x16xf32> -> vector<20x16xf32>
    %50 = arith.addf %47, %49 : vector<20x16xf32>
    %c0_53 = arith.constant 0 : index
    %c0_54 = arith.constant 0 : index
    %51 = vector.load %arg10[%c0_53, %c0_54] : memref<20x4xf32, #tpu.memory_space<vmem>>, vector<20x4xf32>
    %cst_55 = arith.constant dense<0.000000e+00> : vector<20x16xf32>
    %52 = tpu.matmul %51, %40, %cst_55 {dimension_numbers = #tpu.dot_dimension_numbers<[1], [0], [0], [1], [0, 0, 1, 1], [], []>} : vector<20x4xf32>, vector<4x16xf32>, vector<20x16xf32> -> vector<20x16xf32>
    %c0_56 = arith.constant 0 : index
    %c0_57 = arith.constant 0 : index
    %53 = vector.load %arg11[%c0_56, %c0_57] : memref<20x6xf32, #tpu.memory_space<vmem>>, vector<20x6xf32>
    %cst_58 = arith.constant dense<0.000000e+00> : vector<20x16xf32>
    %54 = tpu.matmul %53, %41, %cst_58 {dimension_numbers = #tpu.dot_dimension_numbers<[1], [0], [0], [1], [0, 0, 1, 1], [], []>} : vector<20x6xf32>, vector<6x16xf32>, vector<20x16xf32> -> vector<20x16xf32>
    %55 = arith.addf %52, %54 : vector<20x16xf32>
    %c0_59 = arith.constant 0 : index
    %c0_60 = arith.constant 0 : index
    %56 = vector.load %arg12[%c0_59, %c0_60] : memref<20x10xf32, #tpu.memory_space<vmem>>, vector<20x10xf32>
    %cst_61 = arith.constant dense<0.000000e+00> : vector<20x16xf32>
    %57 = tpu.matmul %56, %42, %cst_61 {dimension_numbers = #tpu.dot_dimension_numbers<[1], [0], [0], [1], [0, 0, 1, 1], [], []>} : vector<20x10xf32>, vector<10x16xf32>, vector<20x16xf32> -> vector<20x16xf32>
    %58 = arith.addf %55, %57 : vector<20x16xf32>
    %c0_62 = arith.constant 0 : index
    %c0_63 = arith.constant 0 : index
    %c0_64 = arith.constant 0 : index
    %c0_65 = arith.constant 0 : index
    %59 = vector.load %arg9[%c0_62, %c0_63, %c0_64, %c0_65] : memref<1x3x20x20xf32, #tpu.memory_space<vmem>>, vector<1x1x20x20xf32>
    %60 = vector.shape_cast %59 : vector<1x1x20x20xf32> to vector<20x20xf32>
    %cst_66 = arith.constant dense<0.000000e+00> : vector<20x16xf32>
    %61 = tpu.matmul %60, %58, %cst_66 {dimension_numbers = #tpu.dot_dimension_numbers<[1], [0], [0], [1], [0, 0, 1, 1], [], []>} : vector<20x20xf32>, vector<20x16xf32>, vector<20x16xf32> -> vector<20x16xf32>
    %62 = arith.addf %50, %61 : vector<20x16xf32>
    %c0_67 = arith.constant 0 : index
    %c0_68 = arith.constant 0 : index
    %63 = vector.load %arg18[%c0_67, %c0_68] : memref<1x16xf32, #tpu.memory_space<vmem>>, vector<1x16xf32>
    %64 = vector.broadcast %63 : vector<1x16xf32> to vector<20x16xf32>
    %65 = arith.addf %62, %64 : vector<20x16xf32>
    %cst_69 = arith.constant 0.000000e+00 : f32
    %66 = vector.broadcast %cst_69 : f32 to vector<20x16xf32>
    %67 = arith.maximumf %65, %66 : vector<20x16xf32>
    %c0_70 = arith.constant 0 : index
    %c0_71 = arith.constant 0 : index
    %c0_72 = arith.constant 0 : index
    %c0_73 = arith.constant 0 : index
    %68 = vector.load %arg29[%c0_70, %c0_71, %c0_72, %c0_73] : memref<1x3x20x16xf32, #tpu.memory_space<vmem>>, vector<1x1x20x16xf32>
    %69 = vector.shape_cast %68 : vector<1x1x20x16xf32> to vector<20x16xf32>
    %70 = vector.shape_cast %67 : vector<20x16xf32> to vector<1x1x20x16xf32>
    tpu.vector_store %arg29[%c0_70, %c0_71, %c0_72, %c0_73], %70 {strides = array<i32>} : memref<1x3x20x16xf32, #tpu.memory_space<vmem>>, vector<1x1x20x16xf32>,
    %c0_74 = arith.constant 0 : index
    %c1 = arith.constant 1 : index
    %c0_75 = arith.constant 0 : index
    %c0_76 = arith.constant 0 : index
    %71 = vector.load %arg9[%c0_74, %c1, %c0_75, %c0_76] : memref<1x3x20x20xf32, #tpu.memory_space<vmem>>, vector<1x1x20x20xf32>
    %72 = vector.shape_cast %71 : vector<1x1x20x20xf32> to vector<20x20xf32>
    %cst_77 = arith.constant dense<0.000000e+00> : vector<20x16xf32>
    %73 = tpu.matmul %72, %58, %cst_77 {dimension_numbers = #tpu.dot_dimension_numbers<[1], [0], [0], [1], [0, 0, 1, 1], [], []>} : vector<20x20xf32>, vector<20x16xf32>, vector<20x16xf32> -> vector<20x16xf32>
    %74 = arith.addf %50, %73 : vector<20x16xf32>
    %c0_78 = arith.constant 0 : index
    %c0_79 = arith.constant 0 : index
    %75 = vector.load %arg18[%c0_78, %c0_79] : memref<1x16xf32, #tpu.memory_space<vmem>>, vector<1x16xf32>
    %76 = vector.broadcast %75 : vector<1x16xf32> to vector<20x16xf32>
    %77 = arith.addf %74, %76 : vector<20x16xf32>
    %cst_80 = arith.constant 0.000000e+00 : f32
    %78 = vector.broadcast %cst_80 : f32 to vector<20x16xf32>
    %79 = arith.maximumf %77, %78 : vector<20x16xf32>
    %c0_81 = arith.constant 0 : index
    %c1_82 = arith.constant 1 : index
    %c0_83 = arith.constant 0 : index
    %c0_84 = arith.constant 0 : index
    %80 = vector.load %arg29[%c0_81, %c1_82, %c0_83, %c0_84] : memref<1x3x20x16xf32, #tpu.memory_space<vmem>>, vector<1x1x20x16xf32>
    %81 = vector.shape_cast %80 : vector<1x1x20x16xf32> to vector<20x16xf32>
    %82 = vector.shape_cast %79 : vector<20x16xf32> to vector<1x1x20x16xf32>
    tpu.vector_store %arg29[%c0_81, %c1_82, %c0_83, %c0_84], %82 {strides = array<i32>} : memref<1x3x20x16xf32, #tpu.memory_space<vmem>>, vector<1x1x20x16xf32>,
    %c0_85 = arith.constant 0 : index
    %c2 = arith.constant 2 : index
    %c0_86 = arith.constant 0 : index
    %c0_87 = arith.constant 0 : index
    %83 = vector.load %arg9[%c0_85, %c2, %c0_86, %c0_87] : memref<1x3x20x20xf32, #tpu.memory_space<vmem>>, vector<1x1x20x20xf32>
    %84 = vector.shape_cast %83 : vector<1x1x20x20xf32> to vector<20x20xf32>
    %cst_88 = arith.constant dense<0.000000e+00> : vector<20x16xf32>
    %85 = tpu.matmul %84, %58, %cst_88 {dimension_numbers = #tpu.dot_dimension_numbers<[1], [0], [0], [1], [0, 0, 1, 1], [], []>} : vector<20x20xf32>, vector<20x16xf32>, vector<20x16xf32> -> vector<20x16xf32>
    %86 = arith.addf %50, %85 : vector<20x16xf32>
    %c0_89 = arith.constant 0 : index
    %c0_90 = arith.constant 0 : index
    %87 = vector.load %arg18[%c0_89, %c0_90] : memref<1x16xf32, #tpu.memory_space<vmem>>, vector<1x16xf32>
    %88 = vector.broadcast %87 : vector<1x16xf32> to vector<20x16xf32>
    %89 = arith.addf %86, %88 : vector<20x16xf32>
    %cst_91 = arith.constant 0.000000e+00 : f32
    %90 = vector.broadcast %cst_91 : f32 to vector<20x16xf32>
    %91 = arith.maximumf %89, %90 : vector<20x16xf32>
    %c0_92 = arith.constant 0 : index
    %c2_93 = arith.constant 2 : index
    %c0_94 = arith.constant 0 : index
    %c0_95 = arith.constant 0 : index
    %92 = vector.load %arg29[%c0_92, %c2_93, %c0_94, %c0_95] : memref<1x3x20x16xf32, #tpu.memory_space<vmem>>, vector<1x1x20x16xf32>
    %93 = vector.shape_cast %92 : vector<1x1x20x16xf32> to vector<20x16xf32>
    %94 = vector.shape_cast %91 : vector<20x16xf32> to vector<1x1x20x16xf32>
    tpu.vector_store %arg29[%c0_92, %c2_93, %c0_94, %c0_95], %94 {strides = array<i32>} : memref<1x3x20x16xf32, #tpu.memory_space<vmem>>, vector<1x1x20x16xf32>,
    %95 = arith.index_cast %arg0 : i32 to index
    %96 = memref.load %arg1[%95] : memref<2xi32, #tpu.memory_space<smem>>
    %c2_i32 = arith.constant 2 : i32
    %97 = arith.cmpi sgt, %96, %c2_i32 : i32
    %cst_96 = arith.constant 2.000000e+00 : f32
    %cst_97 = arith.constant 1.000000e+00 : f32
    %98 = arith.select %97, %cst_96, %cst_97 : f32
    %99 = vector.broadcast %98 : f32 to vector<4x128xf32>
    %100 = arith.mulf %8, %99 : vector<4x128xf32>
    %c0_98 = arith.constant 0 : index
    %c0_99 = arith.constant 0 : index
    %101 = vector.load %arg19[%c0_98, %c0_99] : memref<128x64xf32, #tpu.memory_space<vmem>>, vector<128x64xf32>
    %cst_100 = arith.constant dense<0.000000e+00> : vector<4x64xf32>
    %102 = tpu.matmul %100, %101, %cst_100 {dimension_numbers = #tpu.dot_dimension_numbers<[1], [0], [0], [1], [0, 0, 1, 1], [], []>} : vector<4x128xf32>, vector<128x64xf32>, vector<4x64xf32> -> vector<4x64xf32>
    %c0_101 = arith.constant 0 : index
    %c0_102 = arith.constant 0 : index
    %103 = vector.load %arg20[%c0_101, %c0_102] : memref<1x64xf32, #tpu.memory_space<vmem>>, vector<1x64xf32>
    %104 = vector.broadcast %103 : vector<1x64xf32> to vector<4x64xf32>
    %105 = arith.addf %102, %104 : vector<4x64xf32>
    %cst_103 = arith.constant dense<0.000000e+00> : vector<4xf32>
    %106 = vector.multi_reduction <add>, %105, %cst_103 [1] : vector<4x64xf32> to vector<4xf32>
    %107 = vector.shape_cast %106 : vector<4xf32> to vector<4x1xf32>
    %cst_104 = arith.constant 6.400000e+01 : f32
    %108 = vector.broadcast %cst_104 : f32 to vector<4x1xf32>
    %109 = arith.divf %107, %108 : vector<4x1xf32>
    %110 = vector.broadcast %109 : vector<4x1xf32> to vector<4x64xf32>
    %111 = arith.subf %105, %110 : vector<4x64xf32>
    %112 = arith.mulf %111, %111 : vector<4x64xf32>
    %cst_105 = arith.constant dense<0.000000e+00> : vector<4xf32>
    %113 = vector.multi_reduction <add>, %112, %cst_105 [1] : vector<4x64xf32> to vector<4xf32>
    %114 = vector.shape_cast %113 : vector<4xf32> to vector<4x1xf32>
    %cst_106 = arith.constant 6.400000e+01 : f32
    %115 = vector.broadcast %cst_106 : f32 to vector<4x1xf32>
    %116 = arith.divf %114, %115 : vector<4x1xf32>
    %117 = vector.broadcast %109 : vector<4x1xf32> to vector<4x64xf32>
    %118 = arith.subf %105, %117 : vector<4x64xf32>
    %cst_107 = arith.constant 9.99999974E-6 : f32
    %119 = vector.broadcast %cst_107 : f32 to vector<4x1xf32>
    %120 = arith.addf %116, %119 : vector<4x1xf32>
    %121 = math.rsqrt %120 : vector<4x1xf32>
    %122 = vector.broadcast %121 : vector<4x1xf32> to vector<4x64xf32>
    %123 = arith.mulf %118, %122 : vector<4x64xf32>
    %c0_108 = arith.constant 0 : index
    %c0_109 = arith.constant 0 : index
    %124 = vector.load %arg21[%c0_108, %c0_109] : memref<1x64xf32, #tpu.memory_space<vmem>>, vector<1x64xf32>
    %125 = vector.broadcast %124 : vector<1x64xf32> to vector<4x64xf32>
    %126 = arith.mulf %123, %125 : vector<4x64xf32>
    %c0_110 = arith.constant 0 : index
    %c0_111 = arith.constant 0 : index
    %127 = vector.load %arg22[%c0_110, %c0_111] : memref<1x64xf32, #tpu.memory_space<vmem>>, vector<1x64xf32>
    %128 = vector.broadcast %127 : vector<1x64xf32> to vector<4x64xf32>
    %129 = arith.addf %126, %128 : vector<4x64xf32>
    %cst_112 = arith.constant 0.000000e+00 : f32
    %130 = vector.broadcast %cst_112 : f32 to vector<4x64xf32>
    %131 = arith.maximumf %129, %130 : vector<4x64xf32>
    %c0_113 = arith.constant 0 : index
    %c0_114 = arith.constant 0 : index
    %132 = vector.load %arg23[%c0_113, %c0_114] : memref<64x8xf32, #tpu.memory_space<vmem>>, vector<64x8xf32>
    %cst_115 = arith.constant dense<0.000000e+00> : vector<4x8xf32>
    %133 = tpu.matmul %131, %132, %cst_115 {dimension_numbers = #tpu.dot_dimension_numbers<[1], [0], [0], [1], [0, 0, 1, 1], [], []>} : vector<4x64xf32>, vector<64x8xf32>, vector<4x8xf32> -> vector<4x8xf32>
    %c0_116 = arith.constant 0 : index
    %c0_117 = arith.constant 0 : index
    %134 = vector.load %arg24[%c0_116, %c0_117] : memref<1x8xf32, #tpu.memory_space<vmem>>, vector<1x8xf32>
    %135 = vector.broadcast %134 : vector<1x8xf32> to vector<4x8xf32>
    %136 = arith.addf %133, %135 : vector<4x8xf32>
    %c0_118 = arith.constant 0 : index
    %c0_119 = arith.constant 0 : index
    %c0_120 = arith.constant 0 : index
    %137 = vector.load %arg27[%c0_118, %c0_119, %c0_120] : memref<1x4x8xf32, #tpu.memory_space<vmem>>, vector<1x4x8xf32>
    %138 = vector.shape_cast %137 : vector<1x4x8xf32> to vector<4x8xf32>
    %139 = vector.shape_cast %136 : vector<4x8xf32> to vector<1x4x8xf32>
    tpu.vector_store %arg27[%c0_118, %c0_119, %c0_120], %139 {strides = array<i32>} : memref<1x4x8xf32, #tpu.memory_space<vmem>>, vector<1x4x8xf32>,
    %c0_121 = arith.constant 0 : index
    %c0_122 = arith.constant 0 : index
    %c0_123 = arith.constant 0 : index
    %140 = vector.load %arg6[%c0_121, %c0_122, %c0_123] : memref<1x12x12xf32, #tpu.memory_space<vmem>>, vector<1x12x12xf32>
    %141 = vector.shape_cast %140 : vector<1x12x12xf32> to vector<12x12xf32>
    %cst_124 = arith.constant dense<0.000000e+00> : vector<12x128xf32>
    %142 = tpu.matmul %141, %24, %cst_124 {dimension_numbers = #tpu.dot_dimension_numbers<[1], [0], [0], [1], [0, 0, 1, 1], [], []>} : vector<12x12xf32>, vector<12x128xf32>, vector<12x128xf32> -> vector<12x128xf32>
    %c0_125 = arith.constant 0 : index
    %c0_126 = arith.constant 0 : index
    %143 = vector.load %arg25[%c0_125, %c0_126] : memref<128x2xf32, #tpu.memory_space<vmem>>, vector<128x2xf32>
    %cst_127 = arith.constant dense<0.000000e+00> : vector<12x2xf32>
    %144 = tpu.matmul %142, %143, %cst_127 {dimension_numbers = #tpu.dot_dimension_numbers<[1], [0], [0], [1], [0, 0, 1, 1], [], []>} : vector<12x128xf32>, vector<128x2xf32>, vector<12x2xf32> -> vector<12x2xf32>
    %c0_128 = arith.constant 0 : index
    %c0_129 = arith.constant 0 : index
    %145 = vector.load %arg26[%c0_128, %c0_129] : memref<1x2xf32, #tpu.memory_space<vmem>>, vector<1x2xf32>
    %146 = vector.broadcast %145 : vector<1x2xf32> to vector<12x2xf32>
    %147 = arith.addf %144, %146 : vector<12x2xf32>
    %c0_130 = arith.constant 0 : index
    %c0_131 = arith.constant 0 : index
    %c0_132 = arith.constant 0 : index
    %148 = vector.load %arg28[%c0_130, %c0_131, %c0_132] : memref<1x12x2xf32, #tpu.memory_space<vmem>>, vector<1x12x2xf32>
    %149 = vector.shape_cast %148 : vector<1x12x2xf32> to vector<12x2xf32>
    %150 = vector.shape_cast %147 : vector<12x2xf32> to vector<1x12x2xf32>
    tpu.vector_store %arg28[%c0_130, %c0_131, %c0_132], %150 {strides = array<i32>} : memref<1x12x2xf32, #tpu.memory_space<vmem>>, vector<1x12x2xf32>,
    return
  }
  func.func @transform_0(%arg0: i32, %arg1: memref<2xi32, #tpu.memory_space<smem>>) -> (i32, i32, i32) {
    %c0_i32 = arith.constant 0 : i32
    %c0_i32_0 = arith.constant 0 : i32
    %c0_i32_1 = arith.constant 0 : i32
    return %arg0, %c0_i32, %c0_i32_0 : i32, i32, i32
  }
  func.func @transform_1(%arg0: i32, %arg1: memref<2xi32, #tpu.memory_space<smem>>) -> (i32, i32, i32) {
    %c0_i32 = arith.constant 0 : i32
    %c0_i32_0 = arith.constant 0 : i32
    %c0_i32_1 = arith.constant 0 : i32
    return %arg0, %c0_i32, %c0_i32_0 : i32, i32, i32
  }
  func.func @transform_2(%arg0: i32, %arg1: memref<2xi32, #tpu.memory_space<smem>>) -> (i32, i32, i32) {
    %c0_i32 = arith.constant 0 : i32
    %c0_i32_0 = arith.constant 0 : i32
    %c0_i32_1 = arith.constant 0 : i32
    return %arg0, %c0_i32, %c0_i32_0 : i32, i32, i32
  }
  func.func @transform_3(%arg0: i32, %arg1: memref<2xi32, #tpu.memory_space<smem>>) -> (i32, i32, i32) {
    %c0_i32 = arith.constant 0 : i32
    %c0_i32_0 = arith.constant 0 : i32
    %c0_i32_1 = arith.constant 0 : i32
    return %arg0, %c0_i32, %c0_i32_0 : i32, i32, i32
  }
  func.func @transform_4(%arg0: i32, %arg1: memref<2xi32, #tpu.memory_space<smem>>) -> (i32, i32, i32) {
    %c0_i32 = arith.constant 0 : i32
    %c0_i32_0 = arith.constant 0 : i32
    %c0_i32_1 = arith.constant 0 : i32
    return %arg0, %c0_i32, %c0_i32_0 : i32, i32, i32
  }
  func.func @transform_5(%arg0: i32, %arg1: memref<2xi32, #tpu.memory_space<smem>>) -> (i32, i32, i32) {
    %c0_i32 = arith.constant 0 : i32
    %c0_i32_0 = arith.constant 0 : i32
    %c0_i32_1 = arith.constant 0 : i32
    return %arg0, %c0_i32, %c0_i32_0 : i32, i32, i32
  }
  func.func @transform_6(%arg0: i32, %arg1: memref<2xi32, #tpu.memory_space<smem>>) -> (i32, i32, i32) {
    %c0_i32 = arith.constant 0 : i32
    %c0_i32_0 = arith.constant 0 : i32
    %c0_i32_1 = arith.constant 0 : i32
    return %arg0, %c0_i32, %c0_i32_0 : i32, i32, i32
  }
  func.func @transform_7(%arg0: i32, %arg1: memref<2xi32, #tpu.memory_space<smem>>) -> (i32, i32, i32, i32) {
    %c0_i32 = arith.constant 0 : i32
    %c0_i32_0 = arith.constant 0 : i32
    %c0_i32_1 = arith.constant 0 : i32
    %c0_i32_2 = arith.constant 0 : i32
    return %arg0, %c0_i32, %c0_i32_0, %c0_i32_1 : i32, i32, i32, i32
  }
  func.func @transform_8(%arg0: i32, %arg1: memref<2xi32, #tpu.memory_space<smem>>) -> (i32, i32) {
    %c0_i32 = arith.constant 0 : i32
    %c0_i32_0 = arith.constant 0 : i32
    %c0_i32_1 = arith.constant 0 : i32
    return %c0_i32, %c0_i32_0 : i32, i32
  }
  func.func @transform_9(%arg0: i32, %arg1: memref<2xi32, #tpu.memory_space<smem>>) -> (i32, i32) {
    %c0_i32 = arith.constant 0 : i32
    %c0_i32_0 = arith.constant 0 : i32
    %c0_i32_1 = arith.constant 0 : i32
    return %c0_i32, %c0_i32_0 : i32, i32
  }
  func.func @transform_10(%arg0: i32, %arg1: memref<2xi32, #tpu.memory_space<smem>>) -> (i32, i32) {
    %c0_i32 = arith.constant 0 : i32
    %c0_i32_0 = arith.constant 0 : i32
    %c0_i32_1 = arith.constant 0 : i32
    return %c0_i32, %c0_i32_0 : i32, i32
  }
  func.func @transform_11(%arg0: i32, %arg1: memref<2xi32, #tpu.memory_space<smem>>) -> (i32, i32) {
    %c0_i32 = arith.constant 0 : i32
    %c0_i32_0 = arith.constant 0 : i32
    %c0_i32_1 = arith.constant 0 : i32
    return %c0_i32, %c0_i32_0 : i32, i32
  }
  func.func @transform_12(%arg0: i32, %arg1: memref<2xi32, #tpu.memory_space<smem>>) -> (i32, i32) {
    %c0_i32 = arith.constant 0 : i32
    %c0_i32_0 = arith.constant 0 : i32
    %c0_i32_1 = arith.constant 0 : i32
    return %c0_i32, %c0_i32_0 : i32, i32
  }
  func.func @transform_13(%arg0: i32, %arg1: memref<2xi32, #tpu.memory_space<smem>>) -> (i32, i32) {
    %c0_i32 = arith.constant 0 : i32
    %c0_i32_0 = arith.constant 0 : i32
    %c0_i32_1 = arith.constant 0 : i32
    return %c0_i32, %c0_i32_0 : i32, i32
  }
  func.func @transform_14(%arg0: i32, %arg1: memref<2xi32, #tpu.memory_space<smem>>) -> (i32, i32) {
    %c0_i32 = arith.constant 0 : i32
    %c0_i32_0 = arith.constant 0 : i32
    %c0_i32_1 = arith.constant 0 : i32
    return %c0_i32, %c0_i32_0 : i32, i32
  }
  func.func @transform_15(%arg0: i32, %arg1: memref<2xi32, #tpu.memory_space<smem>>) -> (i32, i32) {
    %c0_i32 = arith.constant 0 : i32
    %c0_i32_0 = arith.constant 0 : i32
    %c0_i32_1 = arith.constant 0 : i32
    return %c0_i32, %c0_i32_0 : i32, i32
  }
  func.func @transform_16(%arg0: i32, %arg1: memref<2xi32, #tpu.memory_space<smem>>) -> (i32, i32) {
    %c0_i32 = arith.constant 0 : i32
    %c0_i32_0 = arith.constant 0 : i32
    %c0_i32_1 = arith.constant 0 : i32
    return %c0_i32, %c0_i32_0 : i32, i32
  }
  func.func @transform_17(%arg0: i32, %arg1: memref<2xi32, #tpu.memory_space<smem>>) -> (i32, i32) {
    %c0_i32 = arith.constant 0 : i32
    %c0_i32_0 = arith.constant 0 : i32
    %c0_i32_1 = arith.constant 0 : i32
    return %c0_i32, %c0_i32_0 : i32, i32
  }
  func.func @transform_18(%arg0: i32, %arg1: memref<2xi32, #tpu.memory_space<smem>>) -> (i32, i32) {
    %c0_i32 = arith.constant 0 : i32
    %c0_i32_0 = arith.constant 0 : i32
    %c0_i32_1 = arith.constant 0 : i32
    return %c0_i32, %c0_i32_0 : i32, i32
  }
  func.func @transform_19(%arg0: i32, %arg1: memref<2xi32, #tpu.memory_space<smem>>) -> (i32, i32) {
    %c0_i32 = arith.constant 0 : i32
    %c0_i32_0 = arith.constant 0 : i32
    %c0_i32_1 = arith.constant 0 : i32
    return %c0_i32, %c0_i32_0 : i32, i32
  }
  func.func @transform_20(%arg0: i32, %arg1: memref<2xi32, #tpu.memory_space<smem>>) -> (i32, i32) {
    %c0_i32 = arith.constant 0 : i32
    %c0_i32_0 = arith.constant 0 : i32
    %c0_i32_1 = arith.constant 0 : i32
    return %c0_i32, %c0_i32_0 : i32, i32
  }
  func.func @transform_21(%arg0: i32, %arg1: memref<2xi32, #tpu.memory_space<smem>>) -> (i32, i32) {
    %c0_i32 = arith.constant 0 : i32
    %c0_i32_0 = arith.constant 0 : i32
    %c0_i32_1 = arith.constant 0 : i32
    return %c0_i32, %c0_i32_0 : i32, i32
  }
  func.func @transform_22(%arg0: i32, %arg1: memref<2xi32, #tpu.memory_space<smem>>) -> (i32, i32) {
    %c0_i32 = arith.constant 0 : i32
    %c0_i32_0 = arith.constant 0 : i32
    %c0_i32_1 = arith.constant 0 : i32
    return %c0_i32, %c0_i32_0 : i32, i32
  }
  func.func @transform_23(%arg0: i32, %arg1: memref<2xi32, #tpu.memory_space<smem>>) -> (i32, i32) {
    %c0_i32 = arith.constant 0 : i32
    %c0_i32_0 = arith.constant 0 : i32
    %c0_i32_1 = arith.constant 0 : i32
    return %c0_i32, %c0_i32_0 : i32, i32
  }
  func.func @transform_24(%arg0: i32, %arg1: memref<2xi32, #tpu.memory_space<smem>>) -> (i32, i32) {
    %c0_i32 = arith.constant 0 : i32
    %c0_i32_0 = arith.constant 0 : i32
    %c0_i32_1 = arith.constant 0 : i32
    return %c0_i32, %c0_i32_0 : i32, i32
  }
  func.func @transform_25(%arg0: i32, %arg1: memref<2xi32, #tpu.memory_space<smem>>) -> (i32, i32, i32) {
    %c0_i32 = arith.constant 0 : i32
    %c0_i32_0 = arith.constant 0 : i32
    %c0_i32_1 = arith.constant 0 : i32
    return %arg0, %c0_i32, %c0_i32_0 : i32, i32, i32
  }
  func.func @transform_26(%arg0: i32, %arg1: memref<2xi32, #tpu.memory_space<smem>>) -> (i32, i32, i32) {
    %c0_i32 = arith.constant 0 : i32
    %c0_i32_0 = arith.constant 0 : i32
    %c0_i32_1 = arith.constant 0 : i32
    return %arg0, %c0_i32, %c0_i32_0 : i32, i32, i32
  }
  func.func @transform_27(%arg0: i32, %arg1: memref<2xi32, #tpu.memory_space<smem>>) -> (i32, i32, i32, i32) {
    %c0_i32 = arith.constant 0 : i32
    %c0_i32_0 = arith.constant 0 : i32
    %c0_i32_1 = arith.constant 0 : i32
    %c0_i32_2 = arith.constant 0 : i32
    return %arg0, %c0_i32, %c0_i32_0, %c0_i32_1 : i32, i32, i32, i32
  }
}

</mosaic_0001>

<bundles_post_ra>
// kernel: _fgnn_core.2
= control target key start
LH: loop header
LB: loop body
LE: loop exit
PB: predicated region body
PF: predicated region fallthrough
CT: control target
= control target key end

     0   :  { %vm18_vm0 = vcmask 261120   ;;  %v78_v2 = vmov 0.0   ;;  %s159_s1 = inlined_call_operand.vmem [shape: f32[128,32], index: 1, kind: input, shape index: {}]   ;;  %s160_s2 = inlined_call_operand.vmem [shape: f32[1,32], index: 2, kind: input, shape index: {}]   ;;  %s161_s0 = inlined_call_operand.vmem [shape: f32[8,128], index: 0, kind: input, shape index: {}]   ;;  %s162_s3 = inlined_call_operand.vmem [shape: f32[8,32], index: 3, kind: output, shape index: {}]  }
   0x1   :  { %v37_v0 = vld [vmem:[%s159_s1 + $0x78] sm:$0xff]  ;;  %v36_v1 = vld [vmem:[%s159_s1 + $0x70] sm:$0xff]  ;;  %19 = vst.msk [vmem:[#allocation2] sm:$0xff] %vm18_vm0, %v78_v2  ;;  %v35_v3 = vld [vmem:[%s159_s1 + $0x68] sm:$0xff] }
   0x2   :  { %38 = vmatpush.msra.mxu0 %v37_v0  ;;  %v34_v4 = vld [vmem:[%s159_s1 + $0x60] sm:$0xff]  ;;  %v33_v5 = vld [vmem:[%s159_s1 + $0x58] sm:$0xff]  ;;  %v32_v6 = vld [vmem:[%s159_s1 + $0x50] sm:$0xff] }
   0x3   :  { %v31_v7 = vld [vmem:[%s159_s1 + $0x48] sm:$0xff]  ;;  %v30_v8 = vld [vmem:[%s159_s1 + $0x40] sm:$0xff]  ;;  %v29_v9 = vld [vmem:[%s159_s1 + $0x38] sm:$0xff] }
   0x4   :  { %39 = vmatpush.msra.mxu0 %v36_v1  ;;  %v28_v10 = vld [vmem:[%s159_s1 + $0x30] sm:$0xff]  ;;  %v27_v11 = vld [vmem:[%s159_s1 + $0x28] sm:$0xff]  ;;  %v26_v12 = vld [vmem:[%s159_s1 + $0x20] sm:$0xff] }
   0x5   :  { %v25_v13 = vld [vmem:[%s159_s1 + $0x18] sm:$0xff]  ;;  %v24_v14 = vld [vmem:[%s159_s1 + $0x10] sm:$0xff]  ;;  %v23_v15 = vld [vmem:[%s159_s1 + $0x8] sm:$0xff] }
   0x6   :  { %40 = vmatpush.msra.mxu0 %v35_v3  ;;  %v22_v16 = vld [vmem:[%s159_s1] sm:$0xff] }
   0x7   :  { %v21_v17 = vld [vmem:[%s161_s0] sm:$0xff] }
   0x8   :  { %41 = vmatpush.msra.mxu0 %v34_v4  ;;  %v20_v18 = vld [vmem:[#allocation2] sm:$0xff] }
   0x9   :  { %v77_v21 = vld [vmem:[%s160_s2] ss:$0 sm:$0xff] }
   0xa   :  { %42 = vmatpush.msra.mxu0 %v33_v5 }
   0xc   :  { %43 = vmatpush.msra.mxu0 %v32_v6 }
   0xe   :  { %44 = vmatpush.msra.mxu0 %v31_v7 }
  0x10   :  { %45 = vmatpush.msra.mxu0 %v30_v8 }
  0x12   :  { %46 = vmatpush.msra.mxu0 %v29_v9 }
  0x14   :  { %47 = vmatpush.msra.mxu0 %v28_v10 }
  0x16   :  { %48 = vmatpush.msra.mxu0 %v27_v11 }
  0x18   :  { %49 = vmatpush.msra.mxu0 %v26_v12 }
  0x1a   :  { %50 = vmatpush.msra.mxu0 %v25_v13 }
  0x1c   :  { %51 = vmatpush.msra.mxu0 %v24_v14 }
  0x1e   :  { %52 = vmatpush.msra.mxu0 %v23_v15 }
  0x20   :  { %53 = vmatpush.msra.mxu0 %v22_v16 }
  0x21   :  { %54 = vmatmul.f32.vlgmr.msra.gmra.mxu0 %v21_v17 }
  0x9e   :  { %v55_v19 = vpop.f32.mrf.mxu0 }
  0x9f   :  { %v58_v20 = vadd.f32 %v55_v19, %v20_v18 }
  0xa1   :  { %60 = vst.msk [vmem:[#allocation2] sm:$0xff] %vm18_vm0, %v58_v20 }
  0xa8   :  { %v64_v22 = vld [vmem:[#allocation2] sm:$0xff] }
  0xa9   :  { %v69_v23 = vadd.f32 %v77_v21, %v64_v22 }
  0xab   :  { %v70_v24 = vmax.f32 %v69_v23, 0.0 }
  0xad   :  { %71 = vst.msk [vmem:[%s162_s3] sm:$0xff] %vm18_vm0, %v70_v24 }

// kernel: _fgnn_core.3
= control target key start
LH: loop header
LB: loop body
LE: loop exit
PB: predicated region body
PF: predicated region fallthrough
CT: control target
= control target key end

     0   :  { %s2468_s30 = smov [#allocation3]   ;;  %s3342_s0 = inlined_call_operand.vmem [shape: s32[2], index: 0, kind: input, shape index: {}]   ;;  %s3343_s1 = inlined_call_operand.vmem [shape: f32[2,4,32], index: 1, kind: input, shape index: {}]   ;;  %s3344_s2 = inlined_call_operand.vmem [shape: f32[2,12,4], index: 2, kind: input, shape index: {}]   ;;  %s3345_s3 = inlined_call_operand.vmem [shape: f32[2,12,4], index: 3, kind: input, shape index: {}]   ;;  %s3346_s4 = inlined_call_operand.vmem [shape: f32[2,6,12], index: 4, kind: input, shape index: {}]   ;;  %s3347_s5 = inlined_call_operand.vmem [shape: f32[2,12,12], index: 5, kind: input, shape index: {}]   ;;  %s3348_s6 = inlined_call_operand.vmem [shape: f32[2,10,4], index: 6, kind: input, shape index: {}]   ;;  %s3349_s7 = inlined_call_operand.vmem [shape: f32[2,10,6], index: 7, kind: input, shape index: {}]   ;;  %s3350_s8 = inlined_call_operand.vmem [shape: f32[2,3,20,20], index: 8, kind: input, shape index: {}]   ;;  %s3351_s9 = inlined_call_operand.vmem [shape: f32[20,4], index: 9, kind: input, shape index: {}]   ;;  %s3352_s10 = inlined_call_operand.vmem [shape: f32[20,6], index: 10, kind: input, shape index: {}]   ;;  %s3353_s11 = inlined_call_operand.vmem [shape: f32[20,10], index: 11, kind: input, shape index: {}]   ;;  %s3354_s12 = inlined_call_operand.vmem [shape: f32[32,128], index: 12, kind: input, shape index: {}]   ;;  %s3355_s13 = inlined_call_operand.vmem [shape: f32[1,128], index: 13, kind: input, shape index: {}]   ;;  %s3356_s14 = inlined_call_operand.vmem [shape: f32[64,128], index: 14, kind: input, shape index: {}]   ;;  %s3357_s15 = inlined_call_operand.vmem [shape: f32[1,128], index: 15, kind: input, shape index: {}]   ;;  %s3358_s16 = inlined_call_operand.vmem [shape: f32[256,16], index: 16, kind: input, shape index: {}]   ;;  %s3359_s17 = inlined_call_operand.vmem [shape: f32[1,16], index: 17, kind: input, shape index: {}]   ;;  %s3360_s18 = inlined_call_operand.vmem [shape: f32[128,64], index: 18, kind: input, shape index: {}]   ;;  %s3361_s19 = inlined_call_operand.vmem [shape: f32[1,64], index: 19, kind: input, shape index: {}]   ;;  %s3362_s20 = inlined_call_operand.vmem [shape: f32[1,64], index: 20, kind: input, shape index: {}]   ;;  %s3363_s21 = inlined_call_operand.vmem [shape: f32[1,64], index: 21, kind: input, shape index: {}]   ;;  %s3364_s22 = inlined_call_operand.vmem [shape: f32[64,8], index: 22, kind: input, shape index: {}]   ;;  %s3365_s23 = inlined_call_operand.vmem [shape: f32[1,8], index: 23, kind: input, shape index: {}]   ;;  %s3366_s24 = inlined_call_operand.vmem [shape: f32[128,2], index: 24, kind: input, shape index: {}]   ;;  %s3367_s25 = inlined_call_operand.vmem [shape: f32[1,2], index: 25, kind: input, shape index: {}]   ;;  %s3368_s26 = inlined_call_operand.hbm [shape: f32[2,4,8], index: 26, kind: output, shape index: {0}]   ;;  %s3369_s27 = inlined_call_operand.vmem [shape: f32[2,12,2], index: 27, kind: output, shape index: {1}]   ;;  %s3370_s28 = inlined_call_operand.vmem [shape: f32[2,3,20,16], index: 28, kind: output, shape index: {2}]  }
   0x1   :  { %3387 = sst [smem:[#allocation15_spill]] %s3342_s0 }
   0x2   :  { %3388 = sst [smem:[#allocation16_spill]] %s3343_s1 }
   0x3   :  { %3389 = sst [smem:[#allocation17_spill]] %s3344_s2 }
   0x4   :  { %3390 = sst [smem:[#allocation18_spill]] %s3345_s3 }
   0x5   :  { %3391 = sst [smem:[#allocation19_spill]] %s3346_s4 }
   0x6   :  { %3392 = sst [smem:[#allocation20_spill]] %s3347_s5 }
   0x7   :  { %3393 = sst [smem:[#allocation21_spill]] %s3348_s6 }
   0x8   :  { %3394 = sst [smem:[#allocation22_spill]] %s3349_s7 }
   0x9   :  { %3395 = sst [smem:[#allocation23_spill]] %s3350_s8 }
   0xa   :  { %3396 = sst [smem:[#allocation24_spill]] %s3351_s9 }
   0xb   :  { %3397 = sst [smem:[#allocation25_spill]] %s3352_s10 }
   0xc   :  { %3398 = sst [smem:[#allocation26_spill]] %s3353_s11 }
   0xd   :  { %3399 = sst [smem:[#allocation27_spill]] %s3354_s12 }
   0xe   :  { %3400 = sst [smem:[#allocation28_spill]] %s3363_s21 }
   0xf   :  { %s3401_s9 = sld [smem:[#allocation15_spill]] }
  0x15   :  { %s35_s21 = sshll.u32 %s3401_s9, 4  ;;  %s36_s21 = int_to_ptr.vmem [resolvable:$true] %s35_s21 }
  0x16   :  { %38 = dma.vmem_to_smem %s36_s21, 16, %s2468_s30, [#allocation2] }
  0x17   :  { %2446 = dma.done.wait [#allocation2], 16 }
  0x18   :  { %2447 = vsyncadd [#allocation2], 4294967280 }
  0x19   :  { %41 = sfence }
  0x1a   :  { %42 = vsyncpa [#allocation5], 0 }
  0x1b   :  { %44 = vsyncpa [#allocation5 + $0x1], 0  ;;  %s2618_s3 = smov 0   ;;  %s2620_s6 = smov 0  }
  0x1c   :  { %s2622_s10 = smov 0   ;;  %s2624_s0 = smov 0  }
  0x1d LB: > { %3402 = sst [smem:[#allocation8_spill]] %s2454_s3  ;;  %s2639_s21 = sadd.s32 4294967295, %s2466_s0   ;;  %s2466_s0 = sphi %s2624_s0, %s3428_s0   ;;  %s2462_s10 = sphi %s2622_s10, %s3430_s10   ;;  %s2458_s6 = sphi %s2620_s6, %s3432_s6   ;;  %s2454_s3 = sphi %s2618_s3, %s3431_s3  }
  0x1e   : > { %3403 = sst [smem:[#allocation9_spill]] %s2462_s10  ;;  %s2232_s11 = sadd.s32 4294967294, %s2466_s0  }
  0x1f   : > { %3404 = sst [smem:[#allocation10_spill]] %s2466_s0  ;;  %s2643_s29 = sadd.s32 1, %s2466_s0  }
  0x20   : > { %3405 = sst [smem:[#allocation11_spill]] %s2643_s29  ;;  %s622_s2 = sadd.s32 1, %s2462_s10 }
  0x21   : > { %s619_s7 = ssub.s32 %s2466_s0, %s2643_s29  ;;  %p632_p0 = scmp.ne.s32.totalorder %s2462_s10, %s2458_s6 }
  0x22   : > { %p620_p1 = scmp.eq.s32.totalorder %s619_s7, 0  ;;  %p633_p2 = scmp.eq.s32.totalorder %s2639_s21, 1 }
  0x23   : > { %p638_p3 = scmp.ne.s32.totalorder %s2458_s6, %s2454_s3  ;;  %p639_p4 = scmp.eq.s32.totalorder %s2232_s11, 1 }
  0x24   : > { %s2654_s12 = scalar_select %p620_p1, %s2462_s10, %s622_s2  }
  0x25   : > { %p2656_p5 = por %p633_p2, %p632_p0  ;;  %p2660_p6 = por %p639_p4, %p638_p3 }
  0x26   : > { %3406 = sst [smem:[#allocation12_spill]] %s2654_s12  ;;  %p2235_p7 = scmp.ge.s32.totalorder %s2466_s0, 1 }
  0x27   : > { %s3407_s1 = scalar_select %p2656_p5, 1, 0 }
  0x28   : > { %s3409_s4 = scalar_select %p2660_p6, 1, 0 }
  0x29   : > { %3408 = sst [smem:[#allocation13_spill]] %s3407_s1  ;;  %p822_p8 = scmp.lt.s32.totalorder %s2466_s0, 3 }
  0x2a   : > { %3410 = sst [smem:[#allocation14_spill]] %s3409_s4 }
  0x2b   : > { %p823_p9 = pnand %p2235_p7, %p822_p8 }
  0x2c   : > { %p937_p10 = scmp.lt.s32.totalorder (!%p823_p9), %s2639_s21, 1  ;;  %s3411_s9 = sld [smem:[#allocation27_spill]] (!%p823_p9) }
  0x2d   : > { %826 = sbr.rel (%p823_p9) target bundleno = 1291 (0x50b), region = 120  ;;  %s3412_s12 = sld [smem:[#allocation16_spill]] (!%p823_p9) }
  0x2e   : > { %s3413_s0 = sld [smem:[#allocation18_spill]] (!%p823_p9) }
  0x2f   : > { %s3414_s10 = sld [smem:[#allocation17_spill]] (!%p823_p9) }
  0x30   : > { %s3415_s5 = sld [smem:[#allocation21_spill]] (!%p823_p9) }
  0x32   : > { %v989_v0 = vld [vmem:[%s3411_s9 + $0x18] sm:$0xff]  ;;  %v988_v1 = vld [vmem:[%s3411_s9 + $0x10] sm:$0xff]  ;;  %v987_v2 = vld [vmem:[%s3411_s9 + $0x8] sm:$0xff]  ;;  %s2683_s3 = scalar_select %p937_p10, %s2639_s21, 1  ;;  %vm1028_vm0 = vcmask 1043456   ;;  %vm1021_vm1 = vcmask 31744  }
  0x33   : > { %1010 = vmatpush.msra.mxu0 %v989_v0  ;;  %v1092_v3 = vld [vmem:[%s3356_s14 + $0x38] sm:$0xff]  ;;  %v1091_v4 = vld [vmem:[%s3356_s14 + $0x30] sm:$0xff]  ;;  %v1090_v5 = vld [vmem:[%s3356_s14 + $0x28] sm:$0xff]  ;;  %vm994_vm2 = vcmask 261120   ;;  %vm1160_vm3 = vcmask 97280   ;;  %vm1198_vm4 = vcmask 1045504  }
  0x34   : > { %1111 = vmatpush.msra.mxu3 %v1092_v3  ;;  %s2237_s30 = sshll.u32 %s2683_s3, 2  ;;  %s2693_s7 = sshll.u32 %s2683_s3, 4  ;;  %v986_v6 = vld [vmem:[%s3411_s9] sm:$0xff]  ;;  %v1088_v13 = vld [vmem:[%s3356_s14 + $0x18] sm:$0xff]  ;;  %v1087_v14 = vld [vmem:[%s3356_s14 + $0x10] sm:$0xff]  ;;  %vm1191_vm5 = vcmask 48128  }
  0x35   : > { %1011 = vmatpush.msra.mxu0 %v988_v1  ;;  %s940_s2 = scalar_lea.vmem %s3412_s12, %s2237_s30  ;;  %s950_s1 = scalar_lea.vmem %s3413_s0, %s2693_s7  ;;  %v1089_v12 = vld [vmem:[%s3356_s14 + $0x20] sm:$0xff]  ;;  %v1086_v15 = vld [vmem:[%s3356_s14 + $0x8] sm:$0xff]  ;;  %v2731_v17 = vld [vmem:[%s3358_s16 + $0x78] sm:$0xff]  ;;  %vm1510_vm6 = vcmask 1041408   ;;  %vm1500_vm7 = vcmask 80896   ;;  %vm1636_vm8 = vcmask 162816  }
  0x36   : > { %1112 = vmatpush.msra.mxu3 %v1091_v4  ;;  %v985_v7 = vld [vmem:[%s940_s2] sm:$0xf]  ;;  %s945_s12 = scalar_lea.vmem %s3414_s10, %s2693_s7  ;;  %v1055_v10 = vld [vmem:[%s950_s1 + $0x8] sm:$0xf]  ;;  %v2737_v18 = vld [vmem:[%s3358_s16 + $0x70] sm:$0xff]  ;;  %s3416_s10 = sld [smem:[#allocation19_spill]] }
  0x37   : > { %1012 = vmatpush.msra.mxu0 %v987_v2  ;;  %2257 = vmatpush.msk.msra.mxu2 %vm1028_vm0, %v985_v7  ;;  %v1054_v8 = vld [vmem:[%s950_s1] sm:$0xff]  ;;  %v1020_v11 = vld [vmem:[%s945_s12 + $0x8] sm:$0xf]  ;;  %v2757_v21 = vld [vmem:[%s3358_s16 + $0x58] sm:$0xff]  ;;  %s964_s1 = scalar_lea.vmem %s3415_s5, %s2693_s7  ;;  %s2242_s5 = sshll.u32 %s2683_s3, 3  ;;  %vm1850_vm9 = vcmask 519168  }
  0x38   : > { %1113 = vmatpush.msra.mxu3 %v1090_v5  ;;  %2254 = vmatpush.msk.msra.mxu1 %vm1028_vm0, %v985_v7  ;;  %v1019_v9 = vld [vmem:[%s945_s12] sm:$0xff]  ;;  %v2743_v19 = vld [vmem:[%s3358_s16 + $0x68] sm:$0xff]  ;;  %v2764_v22 = vld [vmem:[%s3358_s16 + $0x50] sm:$0xff]  ;;  %s3417_s2 = sld [smem:[#allocation22_spill]]  ;;  %vm1688_vm11 = vcmask 130048   ;;  %vm1691_vm12 = vcmask 125952  }
  0x39   : > { %1013 = vmatpush.msra.mxu0 %v986_v6  ;;  %2258 = vmatmul.msk.f32.vlgmr.msra.gmra.mxu2 %vm1021_vm1, %v1054_v8  ;;  %v1085_v16 = vld [vmem:[%s3356_s14] sm:$0xff]  ;;  %v2771_v23 = vld [vmem:[%s3358_s16 + $0x48] sm:$0xff]  ;;  %v2785_v25 = vld [vmem:[%s3358_s16 + $0x38] sm:$0xff]  ;;  %s1805_s0 = sld [smem:[#allocation3 + %s2639_s21]]  ;;  %s920_s30 = sand.u32 1, %s2458_s6  }
  0x3a   : > { %2255 = vmatmul.msk.f32.vlgmr.msra.gmra.mxu1 %vm1021_vm1, %v1019_v9  ;;  %2253 = vmatmul.msk.f32.vlgmr.msra.gmra.mxu0 %vm994_vm2, %v985_v7  ;;  %v2750_v20 = vld [vmem:[%s3358_s16 + $0x60] sm:$0xff]  ;;  %v2795_v27 = vld [vmem:[%s3358_s16 + $0x30] sm:$0xff]  ;;  %v2803_v30 = vld [vmem:[%s3358_s16 + $0x28] sm:$0xff] }
  0x3b   : > { %1114 = vmatpush.msra.mxu3 %v1089_v12  ;;  %1140 = vmatpush.msrb.mxu0 %v1088_v13  ;;  %v2778_v24 = vld [vmem:[%s3358_s16 + $0x40] sm:$0xff]  ;;  %v2819_v34 = vld [vmem:[%s3358_s16 + $0xf8] sm:$0xff]  ;;  %v2833_v37 = vld [vmem:[%s3358_s16 + $0xf0] sm:$0xff] }
  0x3c   : > { %1329 = vmatpush.msrb.mxu2 %v2731_v17  ;;  %v2376_v26 = vld [vmem:[%s3355_s13] ss:$0 sm:$0xff]  ;;  %v2824_v35 = vld [vmem:[%s3358_s16 + $0x18] sm:$0xff]  ;;  %v2838_v38 = vld [vmem:[%s3358_s16 + $0x10] sm:$0xff]  ;;  %s954_s12 = scalar_lea.vmem %s3416_s10, %s2242_s5  ;;  %s3418_s5 = sld [smem:[#allocation24_spill]] }
  0x3d   : > { %1141 = vmatpush.msrb.mxu0 %v1087_v14  ;;  %v2810_v32 = vld [vmem:[%s3358_s16 + $0x20] sm:$0xff]  ;;  %v2847_v40 = vld [vmem:[%s3358_s16 + $0xe8] sm:$0xff]  ;;  %v2873_v44 = vld [vmem:[%s3358_s16 + $0xd8] sm:$0xff]  ;;  %s2334_s10 = smul.u32 72, %s2683_s3 }
  0x3e   : > { %1330 = vmatpush.msrb.mxu2 %v2737_v18  ;;  %v2852_v41 = vld [vmem:[%s3358_s16 + $0x8] sm:$0xff]  ;;  %v2860_v42 = vld [vmem:[%s3358_s16 + $0xe0] sm:$0xff]  ;;  %v2882_v46 = vld [vmem:[%s3358_s16 + $0xd0] sm:$0xff]  ;;  %s969_s29 = scalar_lea.vmem %s3417_s2, %s2693_s7 }
  0x3f   : > { %1142 = vmatpush.msrb.mxu0 %v1086_v15  ;;  %v2865_v43 = vld [vmem:[%s3358_s16] sm:$0xff]  ;;  %v2890_v47 = vld [vmem:[%s3358_s16 + $0xc8] sm:$0xff]  ;;  %v2909_v50 = vld [vmem:[%s3358_s16 + $0xb8] sm:$0xff]  ;;  %p1806_p11 = scmp.gt.s32.totalorder %s1805_s0, 2 }
  0x40   : > { %1331 = vmatpush.msrb.mxu2 %v2743_v19  ;;  %v2902_v48 = vld [vmem:[%s3358_s16 + $0xc0] sm:$0xff]  ;;  %v2917_v51 = vld [vmem:[%s3358_s16 + $0xb0] sm:$0xff]  ;;  %v2924_v52 = vld [vmem:[%s3358_s16 + $0xa8] sm:$0xff] }
  0x41   : > { %2259 = vmatmul.msk.f32.gmra.mxu2 %vm1021_vm1, %v1055_v10  ;;  %1143 = vmatpush.msrb.mxu0 %v1085_v16  ;;  %v1187_v49 = vld [vmem:[%s964_s1] sm:$0xff]  ;;  %v1188_v54 = vld [vmem:[%s964_s1 + $0x8] sm:$0x3]  ;;  %v2938_v55 = vld [vmem:[%s3358_s16 + $0x98] sm:$0xff]  ;;  %s3419_s1 = sld [smem:[#allocation25_spill]] }
  0x42   : > { %2256 = vmatmul.msk.f32.gmra.mxu1 %vm1021_vm1, %v1020_v11  ;;  %1332 = vmatpush.msrb.mxu2 %v2750_v20  ;;  %v2931_v53 = vld [vmem:[%s3358_s16 + $0xa0] sm:$0xff]  ;;  %v2946_v56 = vld [vmem:[%s3358_s16 + $0x90] sm:$0xff]  ;;  %v2953_v57 = vld [vmem:[%s3358_s16 + $0x88] sm:$0xff] }
  0x43   : > { %1289 = vmatpush.msra.mxu0 %v2731_v17  ;;  %v2960_v58 = vld [vmem:[%s3358_s16 + $0x80] sm:$0xff]  ;;  %v1190_v10 = vld [vmem:[%s969_s29 + $0x8] sm:$0x3] }
  0x44   : > { %1333 = vmatpush.msrb.mxu2 %v2757_v21  ;;  %v2377_v0 = vld [vmem:[%s3357_s15] ss:$0 sm:$0xff] }
  0x45   : > { %1290 = vmatpush.msra.mxu0 %v2737_v18  ;;  %v1159_v7 = vld [vmem:[%s954_s12] sm:$0x3f]  ;;  %s3420_s12 = sld [smem:[#allocation26_spill]] }
  0x46   : > { %1334 = vmatpush.msrb.mxu2 %v2764_v22  ;;  %v1189_v8 = vld [vmem:[%s969_s29] sm:$0xff]  ;;  %s1807_s29 = scalar_select %p1806_p11, 2.0, 1.0 }
  0x47   : > { %1291 = vmatpush.msra.mxu0 %v2743_v19 }
  0x48   : > { %1335 = vmatpush.msrb.mxu2 %v2771_v23 }
  0x49   : > { %1292 = vmatpush.msra.mxu0 %v2750_v20 }
  0x4a   : > { %1336 = vmatpush.msrb.mxu2 %v2778_v24 }
  0x4b   : > { %1293 = vmatpush.msra.mxu0 %v2757_v21 }
  0x4c   : > { %1337 = vmatpush.msrb.mxu2 %v2785_v25 }
  0x4d   : > { %1294 = vmatpush.msra.mxu0 %v2764_v22 }
  0x4e   : > { %1338 = vmatpush.msrb.mxu2 %v2795_v27 }
  0x4f   : > { %1295 = vmatpush.msra.mxu0 %v2771_v23 }
  0x50   : > { %1339 = vmatpush.msrb.mxu2 %v2803_v30 }
  0x51   : > { %1296 = vmatpush.msra.mxu0 %v2778_v24 }
  0x52   : > { %1340 = vmatpush.msrb.mxu2 %v2810_v32 }
  0x53   : > { %1297 = vmatpush.msra.mxu0 %v2785_v25 }
  0x54   : > { %1341 = vmatpush.msrb.mxu2 %v2824_v35 }
  0x55   : > { %1298 = vmatpush.msra.mxu0 %v2795_v27 }
  0x56   : > { %1342 = vmatpush.msrb.mxu2 %v2838_v38 }
  0x57   : > { %1299 = vmatpush.msra.mxu0 %v2803_v30 }
  0x58   : > { %1343 = vmatpush.msrb.mxu2 %v2852_v41 }
  0x59   : > { %1300 = vmatpush.msra.mxu0 %v2810_v32 }
  0x5a   : > { %1344 = vmatpush.msrb.mxu2 %v2865_v43 }
  0x5b   : > { %1301 = vmatpush.msra.mxu0 %v2824_v35 }
  0x5d   : > { %1302 = vmatpush.msra.mxu0 %v2838_v38 }
  0x5f   : > { %1303 = vmatpush.msra.mxu0 %v2852_v41 }
  0x61   : > { %1304 = vmatpush.msra.mxu0 %v2865_v43 }
  0xb7   : > { %v1048_v28 = vpop.f32.mrf.mxu1  ;;  %v1015_v29 = vpop.f32.mrf.mxu0 }
  0xb8   : > { %2262 = vmatmul.msk.f32.vlgmr.msrb.gmra.mxu0 %vm994_vm2, %v1048_v28  ;;  %v1016_v31 = vadd.f32 %v2376_v26, %v1015_v29  ;;  %v1497_v29 = vld [vmem:[%s3420_s12] sm:$0xff] }
  0xb9   : > { %1372 = vmatpush.msrb.mxu0 %v2819_v34 }
  0xba   : > { %v2812_v33 = vmax.f32 %v1016_v31, 0.0  ;;  %v1824_v31 = vld [vmem:[%s3360_s18 + $0x70] sm:$0xff] }
  0xbb   : > { %1373 = vmatpush.msrb.mxu0 %v2833_v37 }
  0xbc   : > { %v1079_v36 = vpop.f32.mrf.mxu2  ;;  %2269 = vmatpush.msk.msrb.mxu3 %vm1028_vm0, %v2812_v33 }
  0xbd   : > { %2260 = vmatmul.msk.f32.vlgmr.msra.gmra.mxu3 %vm994_vm2, %v1079_v36  ;;  %1374 = vmatpush.msrb.mxu0 %v2847_v40  ;;  %v1498_v36 = vld [vmem:[%s3420_s12 + $0x8] sm:$0xff] }
  0xbe   : > { %1352 = vmatpush.msra.mxu3 %v2819_v34 }
  0xbf   : > { %v1051_v39 = vpop.f32.mrf.mxu1  ;;  %1375 = vmatpush.msrb.mxu0 %v2860_v42 }
  0xc0   : > { %2263 = vmatmul.msk.f32.gmra.mxu0 %vm994_vm2, %v1051_v39  ;;  %1353 = vmatpush.msra.mxu3 %v2833_v37  ;;  %v1819_v39 = vld [vmem:[%s3360_s18 + $0x48] sm:$0xff] }
  0xc1   : > { %1376 = vmatpush.msrb.mxu0 %v2873_v44 }
  0xc2   : > { %1354 = vmatpush.msra.mxu3 %v2847_v40 }
  0xc3   : > { %1377 = vmatpush.msrb.mxu0 %v2882_v46 }
  0xc4   : > { %v1082_v45 = vpop.f32.mrf.mxu2  ;;  %1355 = vmatpush.msra.mxu3 %v2860_v42 }
  0xc5   : > { %2261 = vmatmul.msk.f32.gmra.mxu3 %vm994_vm2, %v1082_v45  ;;  %1378 = vmatpush.msrb.mxu0 %v2890_v47  ;;  %v1814_v45 = vld [vmem:[%s3360_s18 + $0x20] sm:$0xff]  ;;  %vm2005_vm2 = vcmask 11264  }
  0xc6   : > { %1356 = vmatpush.msra.mxu3 %v2873_v44 }
  0xc7   : > { %1379 = vmatpush.msrb.mxu0 %v2902_v48 }
  0xc8   : > { %1305 = vmatmul.f32.vlgmr.msra.gmra.mxu0 %v2812_v33  ;;  %1357 = vmatpush.msra.mxu3 %v2882_v46 }
  0xc9   : > { %1380 = vmatpush.msrb.mxu0 %v2909_v50 }
  0xca   : > { %1358 = vmatpush.msra.mxu3 %v2890_v47 }
  0xcb   : > { %1381 = vmatpush.msrb.mxu0 %v2917_v51 }
  0xcc   : > { %1359 = vmatpush.msra.mxu3 %v2902_v48 }
  0xcd   : > { %2270 = vmatmul.msk.f32.vlgmr.msrb.gmra.mxu3 %vm1021_vm1, %v1187_v49  ;;  %1382 = vmatpush.msrb.mxu0 %v2924_v52  ;;  %v1811_v49 = vld [vmem:[%s3360_s18 + $0x8] sm:$0xff] }
  0xce   : > { %1360 = vmatpush.msra.mxu3 %v2909_v50 }
  0xcf   : > { %1383 = vmatpush.msrb.mxu0 %v2931_v53 }
  0xd0   : > { %1361 = vmatpush.msra.mxu3 %v2917_v51 }
  0xd1   : > { %1384 = vmatpush.msrb.mxu0 %v2938_v55 }
  0xd2   : > { %1362 = vmatpush.msra.mxu3 %v2924_v52 }
  0xd3   : > { %1385 = vmatpush.msrb.mxu0 %v2946_v56 }
  0xd4   : > { %1363 = vmatpush.msra.mxu3 %v2931_v53 }
  0xd5   : > { %2271 = vmatmul.msk.f32.gmra.mxu3 %vm1021_vm1, %v1188_v54  ;;  %1386 = vmatpush.msrb.mxu0 %v2953_v57 }
  0xd6   : > { %1364 = vmatpush.msra.mxu3 %v2938_v55 }
  0xd7   : > { %1387 = vmatpush.msrb.mxu0 %v2960_v58 }
  0xd8   : > { %1365 = vmatpush.msra.mxu3 %v2946_v56 }
  0xda   : > { %1366 = vmatpush.msra.mxu3 %v2953_v57 }
  0xdc   : > { %1367 = vmatpush.msra.mxu3 %v2960_v58 }
  0xdd   : > { %1368 = vmatmul.f32.vlgmr.msra.gmra.mxu3 %v2812_v33 }
 0x135   : > { %v1145_v59 = vpop.f32.mrf.mxu0 }
 0x13d   : > { %v1148_v60 = vpop.f32.mrf.mxu0 }
 0x140   : > { %v1116_v61 = vpop.f32.mrf.mxu3 }
 0x141   : > { %v1146_v63 = vadd.f32 %v1145_v59, %v1116_v61 }
 0x143   : > { %v2978_v4 = vadd.f32 %v2377_v0, %v1146_v63 }
 0x145   : > { %v1306_v62 = vpop.f32.mrf.mxu0  ;;  %v1157_v6 = vmax.f32 %v2978_v4, 0.0 }
 0x146   : > { %2276 = vmatpush.msk.msra.mxu2 %vm1028_vm0, %v1306_v62 }
 0x148   : > { %v1119_v1 = vpop.f32.mrf.mxu3 }
 0x149   : > { %v1149_v2 = vadd.f32 %v1148_v60, %v1119_v1 }
 0x14b   : > { %v2976_v3 = vadd.f32 %v2377_v0, %v1149_v2 }
 0x14d   : > { %v1158_v5 = vmax.f32 %v2976_v3, 0.0 }
 0x14f   : > { %2264 = vmatpush.msk.msrb.mxu1 %vm1028_vm0, %v1158_v5 }
 0x150   : > { %v1251_v11 = vpop.f32.mrf.mxu3 }
 0x151   : > { %1182 = vmatpush.msrb.mxu1 %v1157_v6 }
 0x152   : > { %2265 = vmatmul.msk.f32.vlgmr.msrb.gmra.mxu1 %vm1160_vm3, %v1159_v7 }
 0x158   : > { %v1254_v12 = vpop.f32.mrf.mxu3 }
 0x160   : > { %v1369_v15 = vpop.f32.mrf.mxu3 }
 0x1cf   : > { %v1184_v9 = vpop.f32.mrf.mxu1 }
 0x1d0   : > { %2266 = vmatpush.msk.msra.mxu1 %vm1198_vm4, %v1184_v9  ;;  %1388 = vmatmul.f32.vlgmr.msrb.gmra.mxu0 %v1184_v9 }
 0x1d1   : > { %2267 = vmatmul.msk.f32.vlgmr.msra.gmra.mxu1 %vm1191_vm5, %v1189_v8 }
 0x1d2   : > { %1309 = vmatpush.msrb.mxu1 %v2731_v17 }
 0x1d4   : > { %1310 = vmatpush.msrb.mxu1 %v2737_v18  ;;  %v1415_v18 = vld [vmem:[%s3418_s5] sm:$0xff] }
 0x1d6   : > { %1311 = vmatpush.msrb.mxu1 %v2743_v19  ;;  %v1416_v19 = vld [vmem:[%s3418_s5 + $0x8] sm:$0xff] }
 0x1d8   : > { %1312 = vmatpush.msrb.mxu1 %v2750_v20 }
 0x1d9   : > { %2268 = vmatmul.msk.f32.gmra.mxu1 %vm1191_vm5, %v1190_v10 }
 0x1da   : > { %1313 = vmatpush.msrb.mxu1 %v2757_v21  ;;  %v1418_v21 = vld [vmem:[%s3419_s1] sm:$0xff] }
 0x1dc   : > { %1314 = vmatpush.msrb.mxu1 %v2764_v22  ;;  %v1417_v22 = vld [vmem:[%s3418_s5 + $0x10] sm:$0xf]  ;;  %s3421_s5 = sld [smem:[#allocation23_spill]] }
 0x1de   : > { %1315 = vmatpush.msrb.mxu1 %v2771_v23 }
 0x1e0   : > { %1316 = vmatpush.msrb.mxu1 %v2778_v24  ;;  %v1419_v24 = vld [vmem:[%s3419_s1 + $0x8] sm:$0xff] }
 0x1e2   : > { %1317 = vmatpush.msrb.mxu1 %v2785_v25  ;;  %v1420_v25 = vld [vmem:[%s3419_s1 + $0x10] sm:$0xf]  ;;  %s3422_s1 = sld [smem:[#allocation20_spill]] }
 0x1e4   : > { %1318 = vmatpush.msrb.mxu1 %v2795_v27 }
 0x1e6   : > { %1319 = vmatpush.msrb.mxu1 %v2803_v30  ;;  %v1825_v30 = vld [vmem:[%s3360_s18 + $0x78] sm:$0xff] }
 0x1e8   : > { %1320 = vmatpush.msrb.mxu1 %v2810_v32  ;;  %s959_s11 = scalar_lea.vmem %s3422_s1, %s2693_s7  ;;  %s2236_s1 = sshll.u32 %s920_s30, 2 }
 0x1ea   : > { %1321 = vmatpush.msrb.mxu1 %v2824_v35  ;;  %v1822_v35 = vld [vmem:[%s3360_s18 + $0x60] sm:$0xff] }
 0x1ec   : > { %1322 = vmatpush.msrb.mxu1 %v2838_v38  ;;  %v1820_v38 = vld [vmem:[%s3360_s18 + $0x50] sm:$0xff] }
 0x1ee   : > { %1323 = vmatpush.msrb.mxu1 %v2852_v41  ;;  %v1499_v41 = vld [vmem:[%s3420_s12 + $0x10] sm:$0xf] }
 0x1f0   : > { %1324 = vmatpush.msrb.mxu1 %v2865_v43  ;;  %v1816_v43 = vld [vmem:[%s3360_s18 + $0x30] sm:$0xff] }
 0x1f1   : > { %1325 = vmatmul.f32.vlgmr.msrb.gmra.mxu1 %v1184_v9 }
 0x1f2   : > { %1392 = vmatpush.msra.mxu1 %v2819_v34  ;;  %v1823_v34 = vld [vmem:[%s3360_s18 + $0x68] sm:$0xff] }
 0x1f4   : > { %1393 = vmatpush.msra.mxu1 %v2833_v37  ;;  %v1821_v37 = vld [vmem:[%s3360_s18 + $0x58] sm:$0xff] }
 0x1f6   : > { %1394 = vmatpush.msra.mxu1 %v2847_v40  ;;  %v1818_v40 = vld [vmem:[%s3360_s18 + $0x40] sm:$0xff] }
 0x1f8   : > { %1395 = vmatpush.msra.mxu1 %v2860_v42  ;;  %v1817_v42 = vld [vmem:[%s3360_s18 + $0x38] sm:$0xff] }
 0x1fa   : > { %1396 = vmatpush.msra.mxu1 %v2873_v44  ;;  %v1815_v44 = vld [vmem:[%s3360_s18 + $0x28] sm:$0xff] }
 0x1fc   : > { %1397 = vmatpush.msra.mxu1 %v2882_v46  ;;  %v1813_v46 = vld [vmem:[%s3360_s18 + $0x18] sm:$0xff] }
 0x1fe   : > { %1398 = vmatpush.msra.mxu1 %v2890_v47 }
 0x200   : > { %1399 = vmatpush.msra.mxu1 %v2902_v48  ;;  %v1812_v48 = vld [vmem:[%s3360_s18 + $0x10] sm:$0xff] }
 0x202   : > { %1400 = vmatpush.msra.mxu1 %v2909_v50 }
 0x204   : > { %1401 = vmatpush.msra.mxu1 %v2917_v51  ;;  %v1808_v51 = vstv %s1807_s29  ;;  %s3140_s29 = scalar_lea.vmem %s3421_s5, %s2334_s10  ;;  %s3202_s5 = scalar_lea.vmem %s3370_s28, %s2334_s10 }
 0x205   : > { %v1809_v54 = vmul.f32 %v1808_v51, %v2812_v33  ;;  %v2381_v51 = vld [vmem:[%s3359_s17] ss:$0 sm:$0xff]  ;;  %s979_s10 = scalar_lea.vmem %s3369_s27, %s2693_s7  ;;  %s922_s7 = scalar_lea.vmem [#allocation4], %s2236_s1 }
 0x206   : > { %1402 = vmatpush.msra.mxu1 %v2924_v52  ;;  %s2030_s0 = sshll.u32 %s922_s7, 4  ;;  %s2422_s1 = scalar_lea.hbm %s3368_s26, 8  ;;  %s2031_s0 = int_to_ptr.vmem [resolvable:$true] %s2030_s0 }
 0x208   : > { %1403 = vmatpush.msra.mxu1 %v2931_v53  ;;  %v1810_v53 = vld [vmem:[%s3360_s18] sm:$0xff] }
 0x20a   : > { %1404 = vmatpush.msra.mxu1 %v2938_v55 }
 0x20c   : > { %1405 = vmatpush.msra.mxu1 %v2946_v56 }
 0x20e   : > { %1406 = vmatpush.msra.mxu1 %v2953_v57 }
 0x210   : > { %1407 = vmatpush.msra.mxu1 %v2960_v58 }
 0x24d   : > { %v1389_v23 = vpop.f32.mrf.mxu0 }
 0x24e   : > { %v1219_v13 = vpop.f32.mrf.mxu1 }
 0x24f   : > { %v1252_v14 = vadd.f32 %v1251_v11, %v1219_v13 }
 0x251   : > { %1345 = vmatmul.f32.vlgmr.msrb.gmra.mxu2 %v1252_v14  ;;  %1408 = vmatmul.f32.vlgmr.msra.gmra.mxu1 %v1252_v14 }
 0x252   : > { %2288 = vmatpush.msk.msrb.mxu2 %vm1028_vm0, %v1369_v15  ;;  %v1633_v15 = vld [vmem:[%s3140_s29] sm:$0xff] }
 0x256   : > { %v1222_v16 = vpop.f32.mrf.mxu1 }
 0x257   : > { %v1255_v17 = vadd.f32 %v1254_v12, %v1222_v16  ;;  %v2300_v16 = vld [vmem:[%s3140_s29 + $0x18] sm:$0xff] }
 0x259   : > { %1348 = vmatmul.f32.gmra.mxu2 %v1255_v17  ;;  %1411 = vmatmul.f32.gmra.mxu1 %v1255_v17  ;;  %v2310_v17 = vld [vmem:[%s3140_s29 + $0x30] sm:$0xff] }
 0x261   : > { %2277 = vmatmul.msk.f32.vlgmr.msra.gmra.mxu2 %vm1021_vm1, %v1415_v18 }
 0x269   : > { %2278 = vmatmul.msk.f32.gmra.mxu2 %vm1021_vm1, %v1416_v19 }
 0x26e   : > { %v1326_v20 = vpop.f32.mrf.mxu1 }
 0x26f   : > { %2272 = vmatpush.msk.msrb.mxu3 %vm1198_vm4, %v1326_v20  ;;  %v2301_v20 = vld [vmem:[%s3140_s29 + $0x20] sm:$0xff] }
 0x270   : > { %2273 = vmatmul.msk.f32.vlgmr.msrb.gmra.mxu3 %vm1191_vm5, %v1418_v21 }
 0x271   : > { %2284 = vmatpush.msk.msra.mxu3 %vm1198_vm4, %v1389_v23  ;;  %2279 = vmatmul.msk.f32.gmra.mxu2 %vm1021_vm1, %v1417_v22  ;;  %v2312_v23 = vld [vmem:[%s3140_s29 + $0x40] sm:$0xf] }
 0x278   : > { %2274 = vmatmul.msk.f32.gmra.mxu3 %vm1191_vm5, %v1419_v24 }
 0x279   : > { %2289 = vmatmul.msk.f32.vlgmr.msrb.gmra.mxu2 %vm1021_vm1, %v1415_v18  ;;  %v2378_v18 = vld [vmem:[%s3361_s19] ss:$0 sm:$0xff] }
 0x280   : > { %2275 = vmatmul.msk.f32.gmra.mxu3 %vm1191_vm5, %v1420_v25 }
 0x281   : > { %2290 = vmatmul.msk.f32.gmra.mxu2 %vm1021_vm1, %v1416_v19  ;;  %v1634_v19 = vld [vmem:[%s3140_s29 + $0x8] sm:$0xff] }
 0x288   : > { %2285 = vmatmul.msk.f32.vlgmr.msra.gmra.mxu3 %vm1191_vm5, %v1418_v21  ;;  %v2311_v21 = vld [vmem:[%s3140_s29 + $0x38] sm:$0xff] }
 0x289   : > { %2291 = vmatmul.msk.f32.gmra.mxu2 %vm1021_vm1, %v1417_v22  ;;  %vm2003_vm1 = vcmask 15360  }
 0x290   : > { %2286 = vmatmul.msk.f32.gmra.mxu3 %vm1191_vm5, %v1419_v24 }
 0x298   : > { %2287 = vmatmul.msk.f32.gmra.mxu3 %vm1191_vm5, %v1420_v25  ;;  %v2469_v25 = vmov 64.0  }
 0x299   : > { %2386 = vrcp.f32 %v2469_v25  ;;  %v1969_v25 = vld [vmem:[%s3366_s24 + $0x48] sm:$0xff] }
 0x2ce   : > { %v1409_v26 = vpop.f32.mrf.mxu1 }
 0x2d4   : > { %v1346_v27 = vpop.f32.mrf.mxu2 }
 0x2d6   : > { %v1412_v28 = vpop.f32.mrf.mxu1 }
 0x2d7   : > { %2292 = vmatpush.msk.msrb.mxu1 %vm1510_vm6, %v1412_v28 }
 0x2d9   : > { %1619 = vmatpush.msrb.mxu1 %v1409_v26  ;;  %v1929_v26 = vld [vmem:[%s959_s11] sm:$0xff] }
 0x2da   : > { %2293 = vmatmul.msk.f32.vlgmr.msrb.gmra.mxu1 %vm1500_vm7, %v1497_v29 }
 0x2db   : > { %1830 = vmatpush.msra.mxu1 %v1825_v30  ;;  %v1930_v30 = vld [vmem:[%s959_s11 + $0x8] sm:$0xf]  ;;  %s2325_s11 = sshll.u32 %s2639_s21, 2 }
 0x2dc   : > { %v1349_v32 = vpop.f32.mrf.mxu2 }
 0x2dd   : > { %1831 = vmatpush.msra.mxu1 %v1824_v31  ;;  %2280 = vmatpush.msk.msra.mxu0 %vm1510_vm6, %v1349_v32 }
 0x2df   : > { %1832 = vmatpush.msra.mxu1 %v1823_v34  ;;  %1529 = vmatpush.msra.mxu0 %v1346_v27  ;;  %v2387_v27 = vpop.eup %2386 }
 0x2e0   : > { %2281 = vmatmul.msk.f32.vlgmr.msra.gmra.mxu0 %vm1500_vm7, %v1497_v29  ;;  %v1855_v29 = vmul.f32 64.0, %v2387_v27  ;;  %vm1859_vm10 = vweird.f32 %v2387_v27 }
 0x2e1   : > { %1833 = vmatpush.msra.mxu1 %v1822_v35 }
 0x2e2   : > { %2294 = vmatmul.msk.f32.gmra.mxu1 %vm1500_vm7, %v1498_v36  ;;  %v1856_v31 = vsub.f32 1.0, %v1855_v29  ;;  %v1965_v29 = vld [vmem:[%s3366_s24 + $0x28] sm:$0xff] }
 0x2e3   : > { %1834 = vmatpush.msra.mxu1 %v1821_v37  ;;  %v2379_v37 = vld [vmem:[%s3359_s17] ss:$0 sm:$0xff] }
 0x2e4   : > { %v1488_v47 = vpop.f32.mrf.mxu2  ;;  %v1857_v34 = vmul.f32 %v2387_v27, %v1856_v31  ;;  %v1963_v31 = vld [vmem:[%s3366_s24 + $0x18] sm:$0xff] }
 0x2e5   : > { %1835 = vmatpush.msra.mxu1 %v1820_v38  ;;  %v1975_v38 = vld [vmem:[%s3366_s24 + $0x78] sm:$0xff] }
 0x2e6   : > { %v1858_v35 = vadd.f32 %v2387_v27, %v1857_v34  ;;  %v1961_v34 = vld [vmem:[%s3366_s24 + $0x8] sm:$0xff] }
 0x2e7   : > { %1836 = vmatpush.msra.mxu1 %v1819_v39  ;;  %v1974_v39 = vld [vmem:[%s3366_s24 + $0x70] sm:$0xff] }
 0x2e8   : > { %2282 = vmatmul.msk.f32.gmra.mxu0 %vm1500_vm7, %v1498_v36 }
 0x2e9   : > { %1837 = vmatpush.msra.mxu1 %v1818_v40 }
 0x2ea   : > { %2295 = vmatmul.msk.f32.gmra.mxu1 %vm1500_vm7, %v1499_v41 }
 0x2eb   : > { %1838 = vmatpush.msra.mxu1 %v1817_v42 }
 0x2ec   : > { %v1491_v55 = vpop.f32.mrf.mxu2 }
 0x2ed   : > { %1839 = vmatpush.msra.mxu1 %v1816_v43  ;;  %v1973_v43 = vld [vmem:[%s3366_s24 + $0x68] sm:$0xff] }
 0x2ef   : > { %1840 = vmatpush.msra.mxu1 %v1815_v44 }
 0x2f0   : > { %2283 = vmatmul.msk.f32.gmra.mxu0 %vm1500_vm7, %v1499_v41  ;;  %v3188_v41 = vsel %vm1859_vm10, %v2387_v27, %v1858_v35  ;;  %v1967_v27 = vld [vmem:[%s3366_s24 + $0x38] sm:$0xff] }
 0x2f1   : > { %1841 = vmatpush.msra.mxu1 %v1814_v45  ;;  %v1898_v35 = vld [vmem:[%s3364_s22 + $0x38] sm:$0xff] }
 0x2f3   : > { %1842 = vmatpush.msra.mxu1 %v1813_v46  ;;  %v1450_v50 = vpop.f32.mrf.mxu3 }
 0x2f4   : > { %v3124_v52 = vadd.f32 %v1488_v47, %v1450_v50  ;;  %v1494_v59 = vpop.f32.mrf.mxu2  ;;  %v1972_v47 = vld [vmem:[%s3366_s24 + $0x60] sm:$0xff] }
 0x2f5   : > { %1843 = vmatpush.msra.mxu1 %v1812_v48  ;;  %v2380_v50 = vld [vmem:[%s3359_s17] ss:$0 sm:$0xff] }
 0x2f7   : > { %1844 = vmatpush.msra.mxu1 %v1811_v49 }
 0x2f9   : > { %1845 = vmatpush.msra.mxu1 %v1810_v53 }
 0x2fa   : > { %1846 = vmatmul.f32.vlgmr.msra.gmra.mxu1 %v1809_v54 }
 0x2fb   : > { %v1453_v56 = vpop.f32.mrf.mxu3 }
 0x2fc   : > { %v3130_v57 = vadd.f32 %v1491_v55, %v1453_v56  ;;  %v1592_v62 = vpop.f32.mrf.mxu2 }
 0x303   : > { %v1456_v58 = vpop.f32.mrf.mxu3 }
 0x304   : > { %v3132_v60 = vadd.f32 %v1494_v59, %v1456_v58  ;;  %v1595_v1 = vpop.f32.mrf.mxu2 }
 0x30b   : > { %v1563_v61 = vpop.f32.mrf.mxu3 }
 0x30c   : > { %v1598_v33 = vpop.f32.mrf.mxu2  ;;  %v1593_v11 = vadd.f32 %v1592_v62, %v1563_v61 }
 0x313   : > { %v1566_v63 = vpop.f32.mrf.mxu3 }
 0x314   : > { %v1596_v9 = vadd.f32 %v1595_v1, %v1566_v63 }
 0x31b   : > { %v1569_v7 = vpop.f32.mrf.mxu3 }
 0x31c   : > { %v1599_v8 = vadd.f32 %v1598_v33, %v1569_v7 }
 0x357   : > { %v1621_v0 = vpop.f32.mrf.mxu1 }
 0x358   : > { %v1630_v14 = vadd.f32 %v1621_v0, %v1593_v11 }
 0x35d   : > { %v1531_v24 = vpop.f32.mrf.mxu0 }
 0x35e   : > { %v1540_v36 = vadd.f32 %v1531_v24, %v3124_v52  ;;  %v1970_v24 = vld [vmem:[%s3366_s24 + $0x50] sm:$0xff] }
 0x35f   : > { %v1624_v2 = vpop.f32.mrf.mxu1 }
 0x360   : > { %v1631_v13 = vadd.f32 %v1624_v2, %v1596_v9 }
 0x365   : > { %v1534_v28 = vpop.f32.mrf.mxu0 }
 0x366   : > { %v1541_v52 = vadd.f32 %v1534_v28, %v3130_v57  ;;  %v1966_v28 = vld [vmem:[%s3366_s24 + $0x30] sm:$0xff] }
 0x367   : > { %v1627_v10 = vpop.f32.mrf.mxu1 }
 0x368   : > { %v1632_v12 = vadd.f32 %v1627_v10, %v1599_v8 }
 0x36a   : > { %2296 = vmatpush.msk.msrb.mxu0 %vm1028_vm0, %v1632_v12  ;;  %2303 = vmatpush.msk.msrb.mxu3 %vm1028_vm0, %v1632_v12 }
 0x36b   : > { %2313 = vmatpush.msk.msra.mxu2 %vm1028_vm0, %v1632_v12 }
 0x36c   : > { %1663 = vmatpush.msrb.mxu0 %v1631_v13  ;;  %1720 = vmatpush.msrb.mxu3 %v1631_v13 }
 0x36d   : > { %1776 = vmatpush.msra.mxu2 %v1631_v13  ;;  %v1537_v32 = vpop.f32.mrf.mxu0 }
 0x36e   : > { %1664 = vmatpush.msrb.mxu0 %v1630_v14  ;;  %1721 = vmatpush.msrb.mxu3 %v1630_v14  ;;  %v1542_v33 = vadd.f32 %v1537_v32, %v3132_v60  ;;  %v1962_v32 = vld [vmem:[%s3366_s24 + $0x10] sm:$0xff] }
 0x36f   : > { %1777 = vmatpush.msra.mxu2 %v1630_v14  ;;  %2297 = vmatmul.msk.f32.vlgmr.msrb.gmra.mxu0 %vm1636_vm8, %v1633_v15 }
 0x370   : > { %2304 = vmatmul.msk.f32.vlgmr.msrb.gmra.mxu3 %vm1636_vm8, %v2300_v16  ;;  %2314 = vmatmul.msk.f32.vlgmr.msra.gmra.mxu2 %vm1636_vm8, %v2310_v17 }
 0x371   : > { %2321 = vmatpush.msk.msra.mxu3 %vm1028_vm0, %v1158_v5  ;;  %v1635_v5 = vld [vmem:[%s3140_s29 + $0x10] sm:$0xf]  ;;  %1980 = vmatpush.msrb.mxu2 %v1975_v38  ;;  %vm1903_vm0 = vcmask 523264  }
 0x372   : > { %1915 = vmatpush.msra.mxu0 %v1898_v35 }
 0x373   : > { %1952 = vmatpush.msra.mxu3 %v1157_v6  ;;  %v2302_v6 = vld [vmem:[%s3140_s29 + $0x28] sm:$0xf]  ;;  %1981 = vmatpush.msrb.mxu2 %v1974_v39  ;;  %s2028_s29 = scalar_lea.hbm %s3368_s26, %s2325_s11 }
 0x374   : > { %v1896_v39 = vld [vmem:[%s3364_s22 + $0x28] sm:$0xff]  ;;  %s2032_s3 = sshll.u32 %s2028_s29, 4  ;;  %s2033_s3 = int_to_ptr.hbm [resolvable:$true] %s2032_s3 }
 0x375   : > { %1982 = vmatpush.msrb.mxu2 %v1973_v43  ;;  %v1893_v43 = vld [vmem:[%s3364_s22 + $0x10] sm:$0xff]  ;;  %s2416_s21 = sshra.s32 %s2033_s3, 4  ;;  %s2417_s21 = int_to_ptr.hbm [resolvable:$true] %s2416_s21 }
 0x376   : > { %s2418_s12 = scalar_lea.hbm %s2417_s21, 4  ;;  %p2423_p1 = scmp.lt.s32.totalorder %s2417_s21, %s3368_s26 }
 0x377   : > { %v1847_v22 = vpop.f32.mrf.mxu1  ;;  %2298 = vmatmul.msk.f32.gmra.mxu0 %vm1636_vm8, %v1634_v19  ;;  %1983 = vmatpush.msrb.mxu2 %v1972_v47  ;;  %p2419_p12 = scmp.ne.s32.totalorder %s2417_s21, %s2418_s12  ;;  %p2424_p2 = scmp.lt.s32.totalorder %s2422_s1, %s2418_s12 }
 0x378   : > { %v1848_v3 = vadd.f32 %v2378_v18, %v1847_v22  ;;  %2305 = vmatmul.msk.f32.gmra.mxu3 %vm1636_vm8, %v2301_v20  ;;  %2315 = vmatmul.msk.f32.gmra.mxu2 %vm1636_vm8, %v2311_v21 }
 0x379   : > { %p2420_p13 = pnand %p2419_p12, %p2656_p5  ;;  %p2425_p3 = por %p2424_p2, %p2423_p1 }
 0x37a   : > { %v1851_v4 = vsel %vm1850_vm9, %v1848_v3, 0.0 }
 0x37b   : > { %1852 = vadd.xlane.f32.xlu0 %v1851_v4  ;;  %p2421_p0 = pneg %p2420_p13 }
 0x37d   : > { %p2426_p4 = pnand %p2425_p3, %p2421_p0 }
 0x37f   : > { %2299 = vmatmul.msk.f32.gmra.mxu0 %vm1636_vm8, %v1635_v5 }
 0x380   : > { %2306 = vmatmul.msk.f32.gmra.mxu3 %vm1636_vm8, %v2302_v6  ;;  %2316 = vmatmul.msk.f32.gmra.mxu2 %vm1636_vm8, %v2312_v23  ;;  %v1971_v23 = vld [vmem:[%s3366_s24 + $0x58] sm:$0xff] }
 0x381   : > { %1984 = vmatpush.msrb.mxu2 %v1971_v23 }
 0x383   : > { %1985 = vmatpush.msrb.mxu2 %v1970_v24 }
 0x385   : > { %1986 = vmatpush.msrb.mxu2 %v1969_v25 }
 0x388   : > { %2322 = vmatmul.msk.f32.vlgmr.msra.gmra.mxu3 %vm1160_vm3, %v1929_v26  ;;  %v1968_v26 = vld [vmem:[%s3366_s24 + $0x40] sm:$0xff] }
 0x389   : > { %1987 = vmatpush.msrb.mxu2 %v1968_v26 }
 0x38b   : > { %1988 = vmatpush.msrb.mxu2 %v1967_v27 }
 0x38d   : > { %1989 = vmatpush.msrb.mxu2 %v1966_v28 }
 0x38f   : > { %1990 = vmatpush.msrb.mxu2 %v1965_v29 }
 0x390   : > { %2323 = vmatmul.msk.f32.gmra.mxu3 %vm1160_vm3, %v1930_v30  ;;  %v1964_v30 = vld [vmem:[%s3366_s24 + $0x20] sm:$0xff]  ;;  %vm1927_vm3 = vcmask 60416  }
 0x391   : > { %1991 = vmatpush.msrb.mxu2 %v1964_v30 }
 0x393   : > { %1992 = vmatpush.msrb.mxu2 %v1963_v31 }
 0x395   : > { %1993 = vmatpush.msrb.mxu2 %v1962_v32 }
 0x397   : > { %1994 = vmatpush.msrb.mxu2 %v1961_v34 }
 0x3ec   : > { %v1666_v40 = vpop.f32.mrf.mxu0 }
 0x3ed   : > { %v1675_v42 = vadd.f32 %v1666_v40, %v1540_v36  ;;  %v1895_v40 = vld [vmem:[%s3364_s22 + $0x20] sm:$0xff] }
 0x3ee   : > { %v1853_v44 = vpop.xlane.xlu0 %1852 }
 0x3ef   : > { %v1682_v45 = vadd.f32 %v2379_v37, %v1675_v42  ;;  %v1861_v46 = vmul.f32 %v3188_v41, %v1853_v44  ;;  %v1894_v42 = vld [vmem:[%s3364_s22 + $0x18] sm:$0xff]  ;;  %v1892_v44 = vld [vmem:[%s3364_s22 + $0x8] sm:$0xff] }
 0x3f1   : > { %v1685_v48 = vmax.f32 %v1682_v45, 0.0  ;;  %v3204_v49 = vsub.f32 %v1848_v3, %v1861_v46  ;;  %v1891_v46 = vld [vmem:[%s3364_s22] sm:$0xff] }
 0x3f3   : > { %1689 = vst.msk [vmem:[%s3202_s5] sm:$0xff] %vm1688_vm11, %v1685_v48  ;;  %v1723_v53 = vpop.f32.mrf.mxu3  ;;  %v1779_v54 = vpop.f32.mrf.mxu2  ;;  %v1863_v55 = vmul.f32 %v3204_v49, %v3204_v49 }
 0x3f4   : > { %v1732_v56 = vadd.f32 %v1723_v53, %v1540_v36  ;;  %v1788_v58 = vadd.f32 %v1779_v54, %v1540_v36  ;;  %v1669_v59 = vpop.f32.mrf.mxu0  ;;  %v1960_v36 = vld [vmem:[%s3366_s24] sm:$0xff] }
 0x3f5   : > { %v1676_v61 = vadd.f32 %v1669_v59, %v1541_v52  ;;  %v1864_v62 = vsel %vm1850_vm9, %v1863_v55, 0.0  ;;  %1995 = vmatpush.msrb.mxu2 %v1960_v36 }
 0x3f6   : > { %v1739_v63 = vadd.f32 %v2380_v50, %v1732_v56  ;;  %v1795_v0 = vadd.f32 %v2381_v51, %v1788_v58  ;;  %1865 = vadd.xlane.f32.xlu0 %v1864_v62  ;;  %v2382_v58 = vld [vmem:[%s3362_s20] ss:$0 sm:$0xff] }
 0x3f7   : > { %v1683_v57 = vadd.f32 %v2379_v37, %v1676_v61 }
 0x3f8   : > { %v1742_v1 = vmax.f32 %v1739_v63, 0.0  ;;  %v1798_v2 = vmax.f32 %v1795_v0, 0.0 }
 0x3f9   : > { %v1686_v7 = vmax.f32 %v1683_v57, 0.0  ;;  %v2384_v57 = vld [vmem:[%s3367_s25] ss:$0 sm:$0xff] }
 0x3fa   : > { %2307 = vst.msk [vmem:[%s3202_s5 + $0x18] sm:$0xff] %vm1688_vm11, %v1742_v1 }
 0x3fb   : > { %2317 = vst.msk [vmem:[%s3202_s5 + $0x30] sm:$0xff] %vm1688_vm11, %v1798_v2  ;;  %v1726_v8 = vpop.f32.mrf.mxu3  ;;  %v1782_v9 = vpop.f32.mrf.mxu2 }
 0x3fc   : > { %1690 = vst.msk [vmem:[%s3202_s5 + $0x8] sm:$0xff] %vm1688_vm11, %v1686_v7  ;;  %v1733_v10 = vadd.f32 %v1726_v8, %v1541_v52  ;;  %v1789_v11 = vadd.f32 %v1782_v9, %v1541_v52  ;;  %v1672_v12 = vpop.f32.mrf.mxu0 }
 0x3fd   : > { %v1677_v13 = vadd.f32 %v1672_v12, %v1542_v33 }
 0x3fe   : > { %v1740_v14 = vadd.f32 %v2380_v50, %v1733_v10  ;;  %v1796_v15 = vadd.f32 %v2381_v51, %v1789_v11 }
 0x3ff   : > { %v1684_v16 = vadd.f32 %v2379_v37, %v1677_v13  ;;  %v1897_v37 = vld [vmem:[%s3364_s22 + $0x30] sm:$0xff] }
 0x400   : > { %v1743_v17 = vmax.f32 %v1740_v14, 0.0  ;;  %v1799_v60 = vmax.f32 %v1796_v15, 0.0  ;;  %1916 = vmatpush.msra.mxu0 %v1897_v37 }
 0x401   : > { %v1687_v18 = vmax.f32 %v1684_v16, 0.0 }
 0x402   : > { %2308 = vst.msk [vmem:[%s3202_s5 + $0x20] sm:$0xff] %vm1688_vm11, %v1743_v17  ;;  %1917 = vmatpush.msra.mxu0 %v1896_v39 }
 0x403   : > { %2318 = vst.msk [vmem:[%s3202_s5 + $0x38] sm:$0xff] %vm1688_vm11, %v1799_v60  ;;  %v1729_v19 = vpop.f32.mrf.mxu3  ;;  %v1785_v20 = vpop.f32.mrf.mxu2 }
 0x404   : > { %1692 = vst.msk [vmem:[%s3202_s5 + $0x10] sm:$0xf] %vm1691_vm12, %v1687_v18  ;;  %v1734_v21 = vadd.f32 %v1729_v19, %v1542_v33  ;;  %v1790_v22 = vadd.f32 %v1785_v20, %v1542_v33  ;;  %1918 = vmatpush.msra.mxu0 %v1895_v40  ;;  %v2385_v33 = vld [vmem:[%s3365_s23] ss:$0 sm:$0xff] }
 0x406   : > { %v1741_v3 = vadd.f32 %v2380_v50, %v1734_v21  ;;  %v1797_v4 = vadd.f32 %v2381_v51, %v1790_v22  ;;  %1919 = vmatpush.msra.mxu0 %v1894_v42 }
 0x408   : > { %v1744_v5 = vmax.f32 %v1741_v3, 0.0  ;;  %v1800_v6 = vmax.f32 %v1797_v4, 0.0  ;;  %1920 = vmatpush.msra.mxu0 %v1893_v43 }
 0x40a   : > { %2309 = vst.msk [vmem:[%s3202_s5 + $0x28] sm:$0xf] %vm1691_vm12, %v1744_v5  ;;  %1921 = vmatpush.msra.mxu0 %v1892_v44 }
 0x40b   : > { %2319 = vst.msk [vmem:[%s3202_s5 + $0x40] sm:$0xf] %vm1691_vm12, %v1800_v6  ;;  %v1954_v38 = vpop.f32.mrf.mxu3  ;;  %s3423_s5 = sld [smem:[#allocation28_spill]] }
 0x40c   : > { %1996 = vmatmul.f32.vlgmr.msrb.gmra.mxu2 %v1954_v38  ;;  %1922 = vmatpush.msra.mxu0 %v1891_v46 }
 0x413   : > { %v1957_v45 = vpop.f32.mrf.mxu3 }
 0x414   : > { %1999 = vmatmul.f32.gmra.mxu2 %v1957_v45 }
 0x469   : > { %v1866_v47 = vpop.xlane.xlu0 %1865 }
 0x46a   : > { %v1867_v48 = vmul.f32 %v1866_v47, %v3188_v41  ;;  %v2383_v41 = vld [vmem:[%s3423_s5] ss:$0 sm:$0xff] }
 0x46c   : > { %v1868_v50 = vadd.f32 1e-05, %v1867_v48 }
 0x46e   : > { %2388 = vrsqrt.f32 %v1868_v50  ;;  %vm1875_vm14 = vweird.f32 %v1868_v50 }
 0x474   : > { %v2389_v51 = vpop.eup %2388 }
 0x475   : > { %v1870_v52 = vmul.f32 %v2389_v51, %v1868_v50  ;;  %vm1876_vm13 = vweird.f32 %v2389_v51 }
 0x476   : > { %vm1877_vm15 = vmor %vm1875_vm14, %vm1876_vm13 }
 0x477   : > { %v1871_v53 = vmul.f32 %v2389_v51, %v1870_v52 }
 0x479   : > { %v1872_v54 = vmul.f32 0.5, %v1871_v53 }
 0x47b   : > { %v1873_v55 = vsub.f32 1.5, %v1872_v54 }
 0x47d   : > { %v1874_v56 = vmul.f32 %v2389_v51, %v1873_v55 }
 0x47f   : > { %v1878_v59 = vsel %vm1877_vm15, %v2389_v51, %v1874_v56 }
 0x480   : > { %v1879_v61 = vmul.f32 %v1878_v59, %v3204_v49 }
 0x482   : > { %v1884_v62 = vmul.f32 %v2382_v58, %v1879_v61 }
 0x484   : > { %v1889_v63 = vadd.f32 %v2383_v41, %v1884_v62 }
 0x486   : > { %v1890_v0 = vmax.f32 %v1889_v63, 0.0 }
 0x488   : > { %2320 = vmatmul.msk.f32.vlgmr.msra.gmra.mxu0 %vm1903_vm0, %v1890_v0 }
 0x48f   : > { %v1997_v49 = vpop.f32.mrf.mxu2 }
 0x490   : > { %v1998_v1 = vadd.f32 %v2384_v57, %v1997_v49 }
 0x492   : > { %2004 = vst.msk [vmem:[%s979_s10] sm:$0xff] %vm2003_vm1, %v1998_v1 }
 0x497   : > { %v2000_v2 = vpop.f32.mrf.mxu2 }
 0x498   : > { %v2001_v7 = vadd.f32 %v2384_v57, %v2000_v2 }
 0x49a   : > { %2006 = vst.msk [vmem:[%s979_s10 + $0x8] sm:$0xf] %vm2005_vm2, %v2001_v7  ;;  %s2008_s10 = scalar_lea.sflag [#allocation5], %s920_s30 }
 0x505   : > { %v1924_v8 = vpop.f32.mrf.mxu0 }
 0x506   : > { %v1925_v9 = vadd.f32 %v2385_v33, %v1924_v8 }
 0x508   : > { %1928 = vst.msk [vmem:[%s922_s7] sm:$0xf] %vm1927_vm3, %v1925_v9 }
 0x509   : > { %2429 = shalt.err (!%p2426_p4)
}
 0x50a   : > { %2335 = dma.vmem_to_hbm [thread:$0]  (%p2656_p5), %s2031_s0, 64, %s2033_s3, %s2008_s10  }
 0x50b PF: > { %s3425_s30 = sld [smem:[#allocation10_spill]] }
 0x50c   : > { %s3426_s5 = sld [smem:[#allocation8_spill]] }
 0x511   : > { %p2341_p7 = scmp.ge.s32.totalorder %s3425_s30, 2 }
 0x512   : > { %s2050_s7 = sand.u32 1, %s3426_s5  }
 0x513   : > { %p2338_p8 = pnand %p2341_p7, %p2660_p6  ;;  %s2051_s11 = scalar_lea.sflag [#allocation5], %s2050_s7 }
 0x515   : > { %p2339_p9 = pneg %p2338_p8 }
 0x517   : > { %2449 = dma.done.wait (%p2339_p9), %s2051_s11, 64  }
 0x518   : > { %2451 = vsyncadd (%p2339_p9), %s2051_s11, 4294967232  ;;  %s3428_s0 = sld [smem:[#allocation11_spill]]  ;;  %s3431_s3 = smov %s2458_s6 }
 0x519   : > { %s3429_s12 = sld [smem:[#allocation9_spill]] }
 0x51a   : > { %s3430_s10 = sld [smem:[#allocation12_spill]] }
 0x51e   : > { %p47_p10 = scmp.ge.s32.totalorder %s3428_s0, 4  }
 0x51f   : > { %s3432_s6 = smov %s3429_s12 }
 0x520   :  { %49 = sbr.rel (!%p47_p10) target bundleno = 29 (0x1d), region = 204 }
 0x525   :  { %2073 = vsyncpa [#allocation5], 1 }
 0x526   :  { %2075 = vsyncpa [#allocation5 + $0x1], 1 }

</bundles_post_ra>
